<compile_context>
chip_gen: v7x
topology: tpu7x:2x2x1
jax: 0.10.0
libtpu: 0.0.40
codegen_flags: <defaults>
</compile_context>

<pallas_src>
import functools

import jax
import jax.numpy as jnp
import numpy as np
from jax.experimental import pallas as pl
from jax.experimental.pallas import tpu as pltpu  # noqa: F401


# ----------------------------------------------------------------------------
# In-kernel helpers (all operate on VMEM-resident values; static shapes only)
# ----------------------------------------------------------------------------
def _shift_r(x, nseg, lseg):
    """Per-batch-segment shift right by one lane, zero fill (x: (C, nseg*lseg))."""
    zero = jnp.zeros((x.shape[0], 1), x.dtype)
    parts = []
    for s in range(nseg):
        seg = x[:, s * lseg:(s + 1) * lseg]
        parts.append(jnp.concatenate([zero, seg[:, :lseg - 1]], axis=1))
    return jnp.concatenate(parts, axis=1)


def _shift_l(x, nseg, lseg):
    """Per-batch-segment shift left by one lane, zero fill."""
    zero = jnp.zeros((x.shape[0], 1), x.dtype)
    parts = []
    for s in range(nseg):
        seg = x[:, s * lseg:(s + 1) * lseg]
        parts.append(jnp.concatenate([seg[:, 1:], zero], axis=1))
    return jnp.concatenate(parts, axis=1)


def _bn(x, g, b, relu, eps=1e-5):
    """Training-mode BatchNorm1d: stats per channel over the lane axis (all (N,L) samples)."""
    mean = jnp.mean(x, axis=1, keepdims=True)
    ctr = x - mean
    var = jnp.mean(ctr * ctr, axis=1, keepdims=True)          # biased variance
    y = ctr * jax.lax.rsqrt(var + eps) * g + b
    return jnp.maximum(y, 0.0) if relu else y


def _conv_s1(h, w_flat, bias, n, lh):
    """k=3, s=1, p=1 conv on a half-resolution signal (C_in, N*Lh) -> (C_out, N*Lh).
    One im2col matmul: slab rows = [x[l-1]; x[l]; x[l+1]]."""
    slab = jnp.concatenate([_shift_r(h, n, lh), h, _shift_l(h, n, lh)], axis=0)
    return jnp.dot(w_flat, slab, preferred_element_type=jnp.float32) + bias


def _conv_s2(x_e, x_o, w_flat, bias, n, lh):
    """k=3, s=2, p=1 conv on full-res even/odd planes -> half-res (C_out, N*Lh).
    out[l] = w0*x[2l-1] + w1*x[2l] + w2*x[2l+1] = w0*odd[l-1] + w1*even[l] + w2*odd[l]."""
    slab = jnp.concatenate([_shift_r(x_o, n, lh), x_e, x_o], axis=0)
    return jnp.dot(w_flat, slab, preferred_element_type=jnp.float32) + bias


def _conv_s1_planes(x_both, w_flat, bias, n, lh):
    """k=3, s=1, p=1 conv on a full-res signal kept in [even|odd]-plane layout
    (C_in, 2*N*Lh) -> (C_out, 2*N*Lh).  Both output planes in a single MXU matmul."""
    nl = n * lh
    x_e, x_o = x_both[:, :nl], x_both[:, nl:]
    slab_e = jnp.concatenate([_shift_r(x_o, n, lh), x_e, x_o], axis=0)   # out[2l]
    slab_o = jnp.concatenate([x_e, x_o, _shift_l(x_e, n, lh)], axis=0)   # out[2l+1]
    slab = jnp.concatenate([slab_e, slab_o], axis=1)                     # (3*C_in, 2*N*Lh)
    return jnp.dot(w_flat, slab, preferred_element_type=jnp.float32) + bias


# ----------------------------------------------------------------------------
# The fused Bridge kernel
# ----------------------------------------------------------------------------
def _bridge_kernel(
    x_ref,
    # down ResidualConv(C, 2C, stride=2)
    d_g1, d_b1, d_w1, d_c1, d_g2, d_b2, d_w2, d_c2, d_ws, d_cs, d_gs, d_bs,
    # upsample ConvTranspose1d(2C, 2C, k=2, s=2)
    t_w, t_b,
    # up ResidualConv(3C, C, stride=1)
    u_g1, u_b1, u_w1, u_c1, u_g2, u_b2, u_w2, u_c2, u_ws, u_cs, u_gs, u_bs,
    o_ref, *, n, lh):
    nl = n * lh
    x = x_ref[...]                                            # (C, 2*N*Lh), [even | odd]

    # ---------------- down = ResidualConv(C, 2C, stride=2) ----------------
    h = _bn(x, d_g1[...], d_b1[...], relu=True)
    h = _conv_s2(h[:, :nl], h[:, nl:], d_w1[...], d_c1[...], n, lh)      # (2C, N*Lh)
    h = _bn(h, d_g2[...], d_b2[...], relu=True)
    h = _conv_s1(h, d_w2[...], d_c2[...], n, lh)                         # (2C, N*Lh)
    s = _conv_s2(x[:, :nl], x[:, nl:], d_ws[...], d_cs[...], n, lh)      # skip conv
    s = _bn(s, d_gs[...], d_bs[...], relu=False)
    d0 = h + s                                                           # (2C, N*Lh)

    # ---------------- bridge: identity (see TODO at top) ----------------

    # ---------------- upsample: ConvTranspose1d(2C, 2C, k=2, s=2) ----------------
    # Row-stacked tap weights: one matmul; even plane = tap 0 rows, odd plane = tap 1 rows.
    t = jnp.dot(t_w[...], d0, preferred_element_type=jnp.float32)        # (2*2C, N*Lh)
    co = t.shape[0] // 2
    d_up = jnp.concatenate([t[:co, :], t[co:, :]], axis=1) + t_b[...]    # (2C, 2*N*Lh)

    # ---------------- concat([x, d], channel) + up = ResidualConv(3C, C, s=1) --------
    cat = jnp.concatenate([x, d_up], axis=0)                             # (3C, 2*N*Lh)
    u = _bn(cat, u_g1[...], u_b1[...], relu=True)
    u = _conv_s1_planes(u, u_w1[...], u_c1[...], n, lh)                  # (C, 2*N*Lh)
    u = _bn(u, u_g2[...], u_b2[...], relu=True)
    u = _conv_s1_planes(u, u_w2[...], u_c2[...], n, lh)                  # (C, 2*N*Lh)
    us = _conv_s1_planes(cat, u_ws[...], u_cs[...], n, lh)               # skip conv
    us = _bn(us, u_gs[...], u_bs[...], relu=False)

    o_ref[...] = (u + us).astype(o_ref.dtype)


# ----------------------------------------------------------------------------
# Wrapper: one-time layout prep (XLA) + single pallas_call
# ----------------------------------------------------------------------------
def bridge_forward(x, params):
    n, c, l = x.shape
    assert l % 2 == 0, "sequence length must be even (stride-2 down / stride-2 up)"
    lh = l // 2
    f32 = jnp.float32

    # x[n, c, 2*lh + p]  ->  x_both[c, p*N*Lh + n*Lh + lh]   ([even|odd], batch-major planes)
    x4 = x.astype(f32).reshape(n, c, lh, 2)
    x_both = jnp.transpose(x4, (1, 3, 0, 2)).reshape(c, 2 * n * lh)

    def wf(w):   # Conv1d weight (C_out, C_in, 3) -> (C_out, 3*C_in), taps [k0 | k1 | k2]
        co, ci, k = w.shape
        return jnp.transpose(w, (0, 2, 1)).reshape(co, k * ci).astype(f32)

    def col(v):  # (C,) -> (C, 1)
        return v.reshape(-1, 1).astype(f32)

    dn, up = params["down"], params["up"]
    tw = params["ups_w"]                                      # PyTorch ConvT weight (C_in, C_out, K)
    ci_t, co_t, kt = tw.shape
    t_w = jnp.transpose(tw, (2, 1, 0)).reshape(kt * co_t, ci_t).astype(f32)  # [k0 rows ; k1 rows]
    t_b = col(params["ups_b"])

    inputs = [
        x_both,
        col(dn["bn1_g"]), col(dn["bn1_b"]), wf(dn["w1"]), col(dn["b1"]),
        col(dn["bn2_g"]), col(dn["bn2_b"]), wf(dn["w2"]), col(dn["b2"]),
        wf(dn["ws"]), col(dn["bs"]), col(dn["bns_g"]), col(dn["bns_b"]),
        t_w, t_b,
        col(up["bn1_g"]), col(up["bn1_b"]), wf(up["w1"]), col(up["b1"]),
        col(up["bn2_g"]), col(up["bn2_b"]), wf(up["w2"]), col(up["b2"]),
        wf(up["ws"]), col(up["bs"]), col(up["bns_g"]), col(up["bns_b"]),
    ]

    kernel = functools.partial(_bridge_kernel, n=n, lh=lh)
    out_both = pl.pallas_call(
        kernel,
        out_shape=jax.ShapeDtypeStruct((c, 2 * n * lh), f32),
    )(*inputs)

    # out_both[c, p*N*Lh + n*Lh + lh] -> y[n, c, 2*lh + p]
    y = out_both.reshape(c, 2, n, lh)
    return jnp.transpose(y, (2, 0, 3, 1)).reshape(n, c, l)


# ----------------------------------------------------------------------------
# Pure-JAX reference (verification only, no Pallas)
# ----------------------------------------------------------------------------
def _ref_bn(x, g, b, relu, eps=1e-5):
    mean = x.mean(axis=(0, 2), keepdims=True)
    var = ((x - mean) ** 2).mean(axis=(0, 2), keepdims=True)
    y = (x - mean) / jnp.sqrt(var + eps) * g[None, :, None] + b[None, :, None]
    return jnp.maximum(y, 0.0) if relu else y


def _ref_conv(x, w, b, stride):
    y = jax.lax.conv_general_dilated(
        x, w, (stride,), [(1, 1)], dimension_numbers=("NCH", "OIH", "NCH"))
    return y + b[None, :, None]


def _ref_convT(x, w, b):
    y = jnp.einsum("ncl,cok->nolk", x, w)                     # (N, C_out, L, K)
    n, co, l, k = y.shape
    return y.reshape(n, co, l * k) + b[None, :, None]


def _ref_residual_conv(x, p, stride):
    h = _ref_bn(x, p["bn1_g"], p["bn1_b"], True)
    h = _ref_conv(h, p["w1"], p["b1"], stride)
    h = _ref_bn(h, p["bn2_g"], p["bn2_b"], True)
    h = _ref_conv(h, p["w2"], p["b2"], 1)
    s = _ref_conv(x, p["ws"], p["bs"], stride)
    s = _ref_bn(s, p["bns_g"], p["bns_b"], False)
    return h + s


def _ref_bridge(x, params):
    d = _ref_residual_conv(x, params["down"], 2)
    d = _ref_convT(d, params["ups_w"], params["ups_b"])
    cat = jnp.concatenate([x, d], axis=1)
    return _ref_residual_conv(cat, params["up"], 1)


# ----------------------------------------------------------------------------
# Deterministic parameter init (PyTorch default BN affine: gamma=1, beta=0)
# ----------------------------------------------------------------------------
def init_residual_conv_params(key, c_in, c_out):
    ks = jax.random.split(key, 6)
    rnd = lambda k, shape: (jax.random.normal(k, shape, jnp.float32) * 0.1)
    return dict(
        bn1_g=jnp.ones((c_in,), jnp.float32), bn1_b=jnp.zeros((c_in,), jnp.float32),
        w1=rnd(ks[0], (c_out, c_in, 3)), b1=rnd(ks[1], (c_out,)),
        bn2_g=jnp.ones((c_out,), jnp.float32), bn2_b=jnp.zeros((c_out,), jnp.float32),
        w2=rnd(ks[2], (c_out, c_out, 3)), b2=rnd(ks[3], (c_out,)),
        ws=rnd(ks[4], (c_out, c_in, 3)), bs=rnd(ks[5], (c_out,)),
        bns_g=jnp.ones((c_out,), jnp.float32), bns_b=jnp.zeros((c_out,), jnp.float32),
    )


if __name__ == "__main__":
    key = jax.random.PRNGKey(0)
    kx, kd, ku, kw, kb = jax.random.split(key, 5)

    N, C, L = 2, 4, 16                                        # in_channels=4, seq len=16
    x = jax.random.normal(kx, (N, C, L), jnp.float32)

    params = dict(
        down=init_residual_conv_params(kd, C, 2 * C),         # ResidualConv(C, 2C, s=2)
        up=init_residual_conv_params(ku, 3 * C, C),           # ResidualConv(3C, C, s=1)
        ups_w=jax.random.normal(kw, (2 * C, 2 * C, 2), jnp.float32) * 0.1,  # ConvT (Cin,Cout,K)
        ups_b=jax.random.normal(kb, (2 * C,), jnp.float32) * 0.1,
    )

    out = jax.jit(bridge_forward)(x, params)
    out = jax.block_until_ready(out)
    assert out.shape == (N, C, L), out.shape

    ref = _ref_bridge(x, params)
    np.testing.assert_allclose(np.asarray(out), np.asarray(ref), rtol=1e-3, atol=1e-3)

    print("KERNEL_OK")
</pallas_src>

<mosaic_0001>
module attributes {stable_mosaic.version = 11 : i64} {
  func.func @_bridge_kernel(%arg0: memref<4x32xf32, #tpu.memory_space<vmem>>, %arg1: memref<4x1xf32, #tpu.memory_space<vmem>>, %arg2: memref<4x1xf32, #tpu.memory_space<vmem>>, %arg3: memref<8x12xf32, #tpu.memory_space<vmem>>, %arg4: memref<8x1xf32, #tpu.memory_space<vmem>>, %arg5: memref<8x1xf32, #tpu.memory_space<vmem>>, %arg6: memref<8x1xf32, #tpu.memory_space<vmem>>, %arg7: memref<8x24xf32, #tpu.memory_space<vmem>>, %arg8: memref<8x1xf32, #tpu.memory_space<vmem>>, %arg9: memref<8x12xf32, #tpu.memory_space<vmem>>, %arg10: memref<8x1xf32, #tpu.memory_space<vmem>>, %arg11: memref<8x1xf32, #tpu.memory_space<vmem>>, %arg12: memref<8x1xf32, #tpu.memory_space<vmem>>, %arg13: memref<16x8xf32, #tpu.memory_space<vmem>>, %arg14: memref<8x1xf32, #tpu.memory_space<vmem>>, %arg15: memref<12x1xf32, #tpu.memory_space<vmem>>, %arg16: memref<12x1xf32, #tpu.memory_space<vmem>>, %arg17: memref<4x36xf32, #tpu.memory_space<vmem>>, %arg18: memref<4x1xf32, #tpu.memory_space<vmem>>, %arg19: memref<4x1xf32, #tpu.memory_space<vmem>>, %arg20: memref<4x1xf32, #tpu.memory_space<vmem>>, %arg21: memref<4x12xf32, #tpu.memory_space<vmem>>, %arg22: memref<4x1xf32, #tpu.memory_space<vmem>>, %arg23: memref<4x36xf32, #tpu.memory_space<vmem>>, %arg24: memref<4x1xf32, #tpu.memory_space<vmem>>, %arg25: memref<4x1xf32, #tpu.memory_space<vmem>>, %arg26: memref<4x1xf32, #tpu.memory_space<vmem>>, %arg27: memref<4x32xf32, #tpu.memory_space<vmem>>) attributes {dimension_semantics = [], scalar_prefetch = 0 : i64, scratch_operands = 0 : i64, tpu.core_type = #tpu.core_type<tc>} {
    %c0 = arith.constant 0 : index
    %c0_0 = arith.constant 0 : index
    %0 = vector.load %arg0[%c0, %c0_0] : memref<4x32xf32, #tpu.memory_space<vmem>>, vector<4x32xf32>
    %c0_1 = arith.constant 0 : index
    %c0_2 = arith.constant 0 : index
    %1 = vector.load %arg1[%c0_1, %c0_2] : memref<4x1xf32, #tpu.memory_space<vmem>>, vector<4x1xf32>
    %c0_3 = arith.constant 0 : index
    %c0_4 = arith.constant 0 : index
    %2 = vector.load %arg2[%c0_3, %c0_4] : memref<4x1xf32, #tpu.memory_space<vmem>>, vector<4x1xf32>
    %cst = arith.constant dense<0.000000e+00> : vector<4xf32>
    %3 = vector.multi_reduction <add>, %0, %cst [1] : vector<4x32xf32> to vector<4xf32>
    %4 = vector.shape_cast %3 : vector<4xf32> to vector<4x1xf32>
    %cst_5 = arith.constant 3.200000e+01 : f32
    %5 = vector.broadcast %cst_5 : f32 to vector<4x1xf32>
    %6 = arith.divf %4, %5 : vector<4x1xf32>
    %7 = vector.broadcast %6 : vector<4x1xf32> to vector<4x32xf32>
    %8 = arith.subf %0, %7 : vector<4x32xf32>
    %9 = arith.mulf %8, %8 : vector<4x32xf32>
    %cst_6 = arith.constant dense<0.000000e+00> : vector<4xf32>
    %10 = vector.multi_reduction <add>, %9, %cst_6 [1] : vector<4x32xf32> to vector<4xf32>
    %11 = vector.shape_cast %10 : vector<4xf32> to vector<4x1xf32>
    %cst_7 = arith.constant 3.200000e+01 : f32
    %12 = vector.broadcast %cst_7 : f32 to vector<4x1xf32>
    %13 = arith.divf %11, %12 : vector<4x1xf32>
    %cst_8 = arith.constant 9.99999974E-6 : f32
    %14 = vector.broadcast %cst_8 : f32 to vector<4x1xf32>
    %15 = arith.addf %13, %14 : vector<4x1xf32>
    %16 = math.rsqrt %15 : vector<4x1xf32>
    %17 = vector.broadcast %16 : vector<4x1xf32> to vector<4x32xf32>
    %18 = arith.mulf %8, %17 : vector<4x32xf32>
    %19 = vector.broadcast %1 : vector<4x1xf32> to vector<4x32xf32>
    %20 = arith.mulf %18, %19 : vector<4x32xf32>
    %21 = vector.broadcast %2 : vector<4x1xf32> to vector<4x32xf32>
    %22 = arith.addf %20, %21 : vector<4x32xf32>
    %cst_9 = arith.constant 0.000000e+00 : f32
    %23 = vector.broadcast %cst_9 : f32 to vector<4x32xf32>
    %24 = arith.maximumf %22, %23 : vector<4x32xf32>
    %25 = vector.extract_strided_slice %24 {offsets = [0, 0], sizes = [4, 16], strides = [1, 1]} : vector<4x32xf32> to vector<4x16xf32>
    %26 = vector.extract_strided_slice %24 {offsets = [0, 16], sizes = [4, 16], strides = [1, 1]} : vector<4x32xf32> to vector<4x16xf32>
    %c0_10 = arith.constant 0 : index
    %c0_11 = arith.constant 0 : index
    %27 = vector.load %arg3[%c0_10, %c0_11] : memref<8x12xf32, #tpu.memory_space<vmem>>, vector<8x12xf32>
    %c0_12 = arith.constant 0 : index
    %c0_13 = arith.constant 0 : index
    %28 = vector.load %arg4[%c0_12, %c0_13] : memref<8x1xf32, #tpu.memory_space<vmem>>, vector<8x1xf32>
    %cst_14 = arith.constant 0.000000e+00 : f32
    %29 = vector.broadcast %cst_14 : f32 to vector<4x1xf32>
    %30 = vector.extract_strided_slice %26 {offsets = [0, 0], sizes = [4, 8], strides = [1, 1]} : vector<4x16xf32> to vector<4x8xf32>
    %31 = vector.extract_strided_slice %30 {offsets = [0, 0], sizes = [4, 7], strides = [1, 1]} : vector<4x8xf32> to vector<4x7xf32>
    %32 = tpu.concatenate %29, %31 in 1 : vector<4x1xf32>, vector<4x7xf32> -> vector<4x8xf32>
    %33 = vector.extract_strided_slice %26 {offsets = [0, 8], sizes = [4, 8], strides = [1, 1]} : vector<4x16xf32> to vector<4x8xf32>
    %34 = vector.extract_strided_slice %33 {offsets = [0, 0], sizes = [4, 7], strides = [1, 1]} : vector<4x8xf32> to vector<4x7xf32>
    %35 = tpu.concatenate %29, %34 in 1 : vector<4x1xf32>, vector<4x7xf32> -> vector<4x8xf32>
    %36 = tpu.concatenate %32, %35 in 1 : vector<4x8xf32>, vector<4x8xf32> -> vector<4x16xf32>
    %37 = tpu.concatenate %36, %25, %26 in 0 : vector<4x16xf32>, vector<4x16xf32>, vector<4x16xf32> -> vector<12x16xf32>
    %cst_15 = arith.constant dense<0.000000e+00> : vector<8x16xf32>
    %38 = tpu.matmul %27, %37, %cst_15 {dimension_numbers = #tpu.dot_dimension_numbers<[1], [0], [0], [1], [0, 0, 1, 1], [], []>} : vector<8x12xf32>, vector<12x16xf32>, vector<8x16xf32> -> vector<8x16xf32>
    %39 = vector.broadcast %28 : vector<8x1xf32> to vector<8x16xf32>
    %40 = arith.addf %38, %39 : vector<8x16xf32>
    %c0_16 = arith.constant 0 : index
    %c0_17 = arith.constant 0 : index
    %41 = vector.load %arg5[%c0_16, %c0_17] : memref<8x1xf32, #tpu.memory_space<vmem>>, vector<8x1xf32>
    %c0_18 = arith.constant 0 : index
    %c0_19 = arith.constant 0 : index
    %42 = vector.load %arg6[%c0_18, %c0_19] : memref<8x1xf32, #tpu.memory_space<vmem>>, vector<8x1xf32>
    %cst_20 = arith.constant dense<0.000000e+00> : vector<8xf32>
    %43 = vector.multi_reduction <add>, %40, %cst_20 [1] : vector<8x16xf32> to vector<8xf32>
    %44 = vector.shape_cast %43 : vector<8xf32> to vector<8x1xf32>
    %cst_21 = arith.constant 1.600000e+01 : f32
    %45 = vector.broadcast %cst_21 : f32 to vector<8x1xf32>
    %46 = arith.divf %44, %45 : vector<8x1xf32>
    %47 = vector.broadcast %46 : vector<8x1xf32> to vector<8x16xf32>
    %48 = arith.subf %40, %47 : vector<8x16xf32>
    %49 = arith.mulf %48, %48 : vector<8x16xf32>
    %cst_22 = arith.constant dense<0.000000e+00> : vector<8xf32>
    %50 = vector.multi_reduction <add>, %49, %cst_22 [1] : vector<8x16xf32> to vector<8xf32>
    %51 = vector.shape_cast %50 : vector<8xf32> to vector<8x1xf32>
    %cst_23 = arith.constant 1.600000e+01 : f32
    %52 = vector.broadcast %cst_23 : f32 to vector<8x1xf32>
    %53 = arith.divf %51, %52 : vector<8x1xf32>
    %cst_24 = arith.constant 9.99999974E-6 : f32
    %54 = vector.broadcast %cst_24 : f32 to vector<8x1xf32>
    %55 = arith.addf %53, %54 : vector<8x1xf32>
    %56 = math.rsqrt %55 : vector<8x1xf32>
    %57 = vector.broadcast %56 : vector<8x1xf32> to vector<8x16xf32>
    %58 = arith.mulf %48, %57 : vector<8x16xf32>
    %59 = vector.broadcast %41 : vector<8x1xf32> to vector<8x16xf32>
    %60 = arith.mulf %58, %59 : vector<8x16xf32>
    %61 = vector.broadcast %42 : vector<8x1xf32> to vector<8x16xf32>
    %62 = arith.addf %60, %61 : vector<8x16xf32>
    %cst_25 = arith.constant 0.000000e+00 : f32
    %63 = vector.broadcast %cst_25 : f32 to vector<8x16xf32>
    %64 = arith.maximumf %62, %63 : vector<8x16xf32>
    %c0_26 = arith.constant 0 : index
    %c0_27 = arith.constant 0 : index
    %65 = vector.load %arg7[%c0_26, %c0_27] : memref<8x24xf32, #tpu.memory_space<vmem>>, vector<8x24xf32>
    %c0_28 = arith.constant 0 : index
    %c0_29 = arith.constant 0 : index
    %66 = vector.load %arg8[%c0_28, %c0_29] : memref<8x1xf32, #tpu.memory_space<vmem>>, vector<8x1xf32>
    %cst_30 = arith.constant 0.000000e+00 : f32
    %67 = vector.broadcast %cst_30 : f32 to vector<8x1xf32>
    %68 = vector.extract_strided_slice %64 {offsets = [0, 0], sizes = [8, 8], strides = [1, 1]} : vector<8x16xf32> to vector<8x8xf32>
    %69 = vector.extract_strided_slice %68 {offsets = [0, 0], sizes = [8, 7], strides = [1, 1]} : vector<8x8xf32> to vector<8x7xf32>
    %70 = tpu.concatenate %67, %69 in 1 : vector<8x1xf32>, vector<8x7xf32> -> vector<8x8xf32>
    %71 = vector.extract_strided_slice %64 {offsets = [0, 8], sizes = [8, 8], strides = [1, 1]} : vector<8x16xf32> to vector<8x8xf32>
    %72 = vector.extract_strided_slice %71 {offsets = [0, 0], sizes = [8, 7], strides = [1, 1]} : vector<8x8xf32> to vector<8x7xf32>
    %73 = tpu.concatenate %67, %72 in 1 : vector<8x1xf32>, vector<8x7xf32> -> vector<8x8xf32>
    %74 = tpu.concatenate %70, %73 in 1 : vector<8x8xf32>, vector<8x8xf32> -> vector<8x16xf32>
    %cst_31 = arith.constant 0.000000e+00 : f32
    %75 = vector.broadcast %cst_31 : f32 to vector<8x1xf32>
    %76 = vector.extract_strided_slice %64 {offsets = [0, 0], sizes = [8, 8], strides = [1, 1]} : vector<8x16xf32> to vector<8x8xf32>
    %77 = vector.extract_strided_slice %76 {offsets = [0, 1], sizes = [8, 7], strides = [1, 1]} : vector<8x8xf32> to vector<8x7xf32>
    %78 = tpu.concatenate %77, %75 in 1 : vector<8x7xf32>, vector<8x1xf32> -> vector<8x8xf32>
    %79 = vector.extract_strided_slice %64 {offsets = [0, 8], sizes = [8, 8], strides = [1, 1]} : vector<8x16xf32> to vector<8x8xf32>
    %80 = vector.extract_strided_slice %79 {offsets = [0, 1], sizes = [8, 7], strides = [1, 1]} : vector<8x8xf32> to vector<8x7xf32>
    %81 = tpu.concatenate %80, %75 in 1 : vector<8x7xf32>, vector<8x1xf32> -> vector<8x8xf32>
    %82 = tpu.concatenate %78, %81 in 1 : vector<8x8xf32>, vector<8x8xf32> -> vector<8x16xf32>
    %83 = tpu.concatenate %74, %64, %82 in 0 : vector<8x16xf32>, vector<8x16xf32>, vector<8x16xf32> -> vector<24x16xf32>
    %cst_32 = arith.constant dense<0.000000e+00> : vector<8x16xf32>
    %84 = tpu.matmul %65, %83, %cst_32 {dimension_numbers = #tpu.dot_dimension_numbers<[1], [0], [0], [1], [0, 0, 1, 1], [], []>} : vector<8x24xf32>, vector<24x16xf32>, vector<8x16xf32> -> vector<8x16xf32>
    %85 = vector.broadcast %66 : vector<8x1xf32> to vector<8x16xf32>
    %86 = arith.addf %84, %85 : vector<8x16xf32>
    %87 = vector.extract_strided_slice %0 {offsets = [0, 0], sizes = [4, 16], strides = [1, 1]} : vector<4x32xf32> to vector<4x16xf32>
    %88 = vector.extract_strided_slice %0 {offsets = [0, 16], sizes = [4, 16], strides = [1, 1]} : vector<4x32xf32> to vector<4x16xf32>
    %c0_33 = arith.constant 0 : index
    %c0_34 = arith.constant 0 : index
    %89 = vector.load %arg9[%c0_33, %c0_34] : memref<8x12xf32, #tpu.memory_space<vmem>>, vector<8x12xf32>
    %c0_35 = arith.constant 0 : index
    %c0_36 = arith.constant 0 : index
    %90 = vector.load %arg10[%c0_35, %c0_36] : memref<8x1xf32, #tpu.memory_space<vmem>>, vector<8x1xf32>
    %cst_37 = arith.constant 0.000000e+00 : f32
    %91 = vector.broadcast %cst_37 : f32 to vector<4x1xf32>
    %92 = vector.extract_strided_slice %88 {offsets = [0, 0], sizes = [4, 8], strides = [1, 1]} : vector<4x16xf32> to vector<4x8xf32>
    %93 = vector.extract_strided_slice %92 {offsets = [0, 0], sizes = [4, 7], strides = [1, 1]} : vector<4x8xf32> to vector<4x7xf32>
    %94 = tpu.concatenate %91, %93 in 1 : vector<4x1xf32>, vector<4x7xf32> -> vector<4x8xf32>
    %95 = vector.extract_strided_slice %88 {offsets = [0, 8], sizes = [4, 8], strides = [1, 1]} : vector<4x16xf32> to vector<4x8xf32>
    %96 = vector.extract_strided_slice %95 {offsets = [0, 0], sizes = [4, 7], strides = [1, 1]} : vector<4x8xf32> to vector<4x7xf32>
    %97 = tpu.concatenate %91, %96 in 1 : vector<4x1xf32>, vector<4x7xf32> -> vector<4x8xf32>
    %98 = tpu.concatenate %94, %97 in 1 : vector<4x8xf32>, vector<4x8xf32> -> vector<4x16xf32>
    %99 = tpu.concatenate %98, %87, %88 in 0 : vector<4x16xf32>, vector<4x16xf32>, vector<4x16xf32> -> vector<12x16xf32>
    %cst_38 = arith.constant dense<0.000000e+00> : vector<8x16xf32>
    %100 = tpu.matmul %89, %99, %cst_38 {dimension_numbers = #tpu.dot_dimension_numbers<[1], [0], [0], [1], [0, 0, 1, 1], [], []>} : vector<8x12xf32>, vector<12x16xf32>, vector<8x16xf32> -> vector<8x16xf32>
    %101 = vector.broadcast %90 : vector<8x1xf32> to vector<8x16xf32>
    %102 = arith.addf %100, %101 : vector<8x16xf32>
    %c0_39 = arith.constant 0 : index
    %c0_40 = arith.constant 0 : index
    %103 = vector.load %arg11[%c0_39, %c0_40] : memref<8x1xf32, #tpu.memory_space<vmem>>, vector<8x1xf32>
    %c0_41 = arith.constant 0 : index
    %c0_42 = arith.constant 0 : index
    %104 = vector.load %arg12[%c0_41, %c0_42] : memref<8x1xf32, #tpu.memory_space<vmem>>, vector<8x1xf32>
    %cst_43 = arith.constant dense<0.000000e+00> : vector<8xf32>
    %105 = vector.multi_reduction <add>, %102, %cst_43 [1] : vector<8x16xf32> to vector<8xf32>
    %106 = vector.shape_cast %105 : vector<8xf32> to vector<8x1xf32>
    %cst_44 = arith.constant 1.600000e+01 : f32
    %107 = vector.broadcast %cst_44 : f32 to vector<8x1xf32>
    %108 = arith.divf %106, %107 : vector<8x1xf32>
    %109 = vector.broadcast %108 : vector<8x1xf32> to vector<8x16xf32>
    %110 = arith.subf %102, %109 : vector<8x16xf32>
    %111 = arith.mulf %110, %110 : vector<8x16xf32>
    %cst_45 = arith.constant dense<0.000000e+00> : vector<8xf32>
    %112 = vector.multi_reduction <add>, %111, %cst_45 [1] : vector<8x16xf32> to vector<8xf32>
    %113 = vector.shape_cast %112 : vector<8xf32> to vector<8x1xf32>
    %cst_46 = arith.constant 1.600000e+01 : f32
    %114 = vector.broadcast %cst_46 : f32 to vector<8x1xf32>
    %115 = arith.divf %113, %114 : vector<8x1xf32>
    %cst_47 = arith.constant 9.99999974E-6 : f32
    %116 = vector.broadcast %cst_47 : f32 to vector<8x1xf32>
    %117 = arith.addf %115, %116 : vector<8x1xf32>
    %118 = math.rsqrt %117 : vector<8x1xf32>
    %119 = vector.broadcast %118 : vector<8x1xf32> to vector<8x16xf32>
    %120 = arith.mulf %110, %119 : vector<8x16xf32>
    %121 = vector.broadcast %103 : vector<8x1xf32> to vector<8x16xf32>
    %122 = arith.mulf %120, %121 : vector<8x16xf32>
    %123 = vector.broadcast %104 : vector<8x1xf32> to vector<8x16xf32>
    %124 = arith.addf %122, %123 : vector<8x16xf32>
    %125 = arith.addf %86, %124 : vector<8x16xf32>
    %c0_48 = arith.constant 0 : index
    %c0_49 = arith.constant 0 : index
    %126 = vector.load %arg13[%c0_48, %c0_49] : memref<16x8xf32, #tpu.memory_space<vmem>>, vector<16x8xf32>
    %cst_50 = arith.constant dense<0.000000e+00> : vector<16x16xf32>
    %127 = tpu.matmul %126, %125, %cst_50 {dimension_numbers = #tpu.dot_dimension_numbers<[1], [0], [0], [1], [0, 0, 1, 1], [], []>} : vector<16x8xf32>, vector<8x16xf32>, vector<16x16xf32> -> vector<16x16xf32>
    %128 = vector.extract_strided_slice %127 {offsets = [0, 0], sizes = [8, 16], strides = [1, 1]} : vector<16x16xf32> to vector<8x16xf32>
    %129 = vector.extract_strided_slice %127 {offsets = [8, 0], sizes = [8, 16], strides = [1, 1]} : vector<16x16xf32> to vector<8x16xf32>
    %130 = tpu.concatenate %128, %129 in 1 : vector<8x16xf32>, vector<8x16xf32> -> vector<8x32xf32>
    %c0_51 = arith.constant 0 : index
    %c0_52 = arith.constant 0 : index
    %131 = vector.load %arg14[%c0_51, %c0_52] : memref<8x1xf32, #tpu.memory_space<vmem>>, vector<8x1xf32>
    %132 = vector.broadcast %131 : vector<8x1xf32> to vector<8x32xf32>
    %133 = arith.addf %130, %132 : vector<8x32xf32>
    %134 = tpu.concatenate %0, %133 in 0 : vector<4x32xf32>, vector<8x32xf32> -> vector<12x32xf32>
    %c0_53 = arith.constant 0 : index
    %c0_54 = arith.constant 0 : index
    %135 = vector.load %arg15[%c0_53, %c0_54] : memref<12x1xf32, #tpu.memory_space<vmem>>, vector<12x1xf32>
    %c0_55 = arith.constant 0 : index
    %c0_56 = arith.constant 0 : index
    %136 = vector.load %arg16[%c0_55, %c0_56] : memref<12x1xf32, #tpu.memory_space<vmem>>, vector<12x1xf32>
    %cst_57 = arith.constant dense<0.000000e+00> : vector<12xf32>
    %137 = vector.multi_reduction <add>, %134, %cst_57 [1] : vector<12x32xf32> to vector<12xf32>
    %138 = vector.shape_cast %137 : vector<12xf32> to vector<12x1xf32>
    %cst_58 = arith.constant 3.200000e+01 : f32
    %139 = vector.broadcast %cst_58 : f32 to vector<12x1xf32>
    %140 = arith.divf %138, %139 : vector<12x1xf32>
    %141 = vector.broadcast %140 : vector<12x1xf32> to vector<12x32xf32>
    %142 = arith.subf %134, %141 : vector<12x32xf32>
    %143 = arith.mulf %142, %142 : vector<12x32xf32>
    %cst_59 = arith.constant dense<0.000000e+00> : vector<12xf32>
    %144 = vector.multi_reduction <add>, %143, %cst_59 [1] : vector<12x32xf32> to vector<12xf32>
    %145 = vector.shape_cast %144 : vector<12xf32> to vector<12x1xf32>
    %cst_60 = arith.constant 3.200000e+01 : f32
    %146 = vector.broadcast %cst_60 : f32 to vector<12x1xf32>
    %147 = arith.divf %145, %146 : vector<12x1xf32>
    %cst_61 = arith.constant 9.99999974E-6 : f32
    %148 = vector.broadcast %cst_61 : f32 to vector<12x1xf32>
    %149 = arith.addf %147, %148 : vector<12x1xf32>
    %150 = math.rsqrt %149 : vector<12x1xf32>
    %151 = vector.broadcast %150 : vector<12x1xf32> to vector<12x32xf32>
    %152 = arith.mulf %142, %151 : vector<12x32xf32>
    %153 = vector.broadcast %135 : vector<12x1xf32> to vector<12x32xf32>
    %154 = arith.mulf %152, %153 : vector<12x32xf32>
    %155 = vector.broadcast %136 : vector<12x1xf32> to vector<12x32xf32>
    %156 = arith.addf %154, %155 : vector<12x32xf32>
    %cst_62 = arith.constant 0.000000e+00 : f32
    %157 = vector.broadcast %cst_62 : f32 to vector<12x32xf32>
    %158 = arith.maximumf %156, %157 : vector<12x32xf32>
    %c0_63 = arith.constant 0 : index
    %c0_64 = arith.constant 0 : index
    %159 = vector.load %arg17[%c0_63, %c0_64] : memref<4x36xf32, #tpu.memory_space<vmem>>, vector<4x36xf32>
    %c0_65 = arith.constant 0 : index
    %c0_66 = arith.constant 0 : index
    %160 = vector.load %arg18[%c0_65, %c0_66] : memref<4x1xf32, #tpu.memory_space<vmem>>, vector<4x1xf32>
    %161 = vector.extract_strided_slice %158 {offsets = [0, 0], sizes = [12, 16], strides = [1, 1]} : vector<12x32xf32> to vector<12x16xf32>
    %162 = vector.extract_strided_slice %158 {offsets = [0, 16], sizes = [12, 16], strides = [1, 1]} : vector<12x32xf32> to vector<12x16xf32>
    %cst_67 = arith.constant 0.000000e+00 : f32
    %163 = vector.broadcast %cst_67 : f32 to vector<12x1xf32>
    %164 = vector.extract_strided_slice %162 {offsets = [0, 0], sizes = [12, 8], strides = [1, 1]} : vector<12x16xf32> to vector<12x8xf32>
    %165 = vector.extract_strided_slice %164 {offsets = [0, 0], sizes = [12, 7], strides = [1, 1]} : vector<12x8xf32> to vector<12x7xf32>
    %166 = tpu.concatenate %163, %165 in 1 : vector<12x1xf32>, vector<12x7xf32> -> vector<12x8xf32>
    %167 = vector.extract_strided_slice %162 {offsets = [0, 8], sizes = [12, 8], strides = [1, 1]} : vector<12x16xf32> to vector<12x8xf32>
    %168 = vector.extract_strided_slice %167 {offsets = [0, 0], sizes = [12, 7], strides = [1, 1]} : vector<12x8xf32> to vector<12x7xf32>
    %169 = tpu.concatenate %163, %168 in 1 : vector<12x1xf32>, vector<12x7xf32> -> vector<12x8xf32>
    %170 = tpu.concatenate %166, %169 in 1 : vector<12x8xf32>, vector<12x8xf32> -> vector<12x16xf32>
    %171 = tpu.concatenate %170, %161, %162 in 0 : vector<12x16xf32>, vector<12x16xf32>, vector<12x16xf32> -> vector<36x16xf32>
    %cst_68 = arith.constant 0.000000e+00 : f32
    %172 = vector.broadcast %cst_68 : f32 to vector<12x1xf32>
    %173 = vector.extract_strided_slice %161 {offsets = [0, 0], sizes = [12, 8], strides = [1, 1]} : vector<12x16xf32> to vector<12x8xf32>
    %174 = vector.extract_strided_slice %173 {offsets = [0, 1], sizes = [12, 7], strides = [1, 1]} : vector<12x8xf32> to vector<12x7xf32>
    %175 = tpu.concatenate %174, %172 in 1 : vector<12x7xf32>, vector<12x1xf32> -> vector<12x8xf32>
    %176 = vector.extract_strided_slice %161 {offsets = [0, 8], sizes = [12, 8], strides = [1, 1]} : vector<12x16xf32> to vector<12x8xf32>
    %177 = vector.extract_strided_slice %176 {offsets = [0, 1], sizes = [12, 7], strides = [1, 1]} : vector<12x8xf32> to vector<12x7xf32>
    %178 = tpu.concatenate %177, %172 in 1 : vector<12x7xf32>, vector<12x1xf32> -> vector<12x8xf32>
    %179 = tpu.concatenate %175, %178 in 1 : vector<12x8xf32>, vector<12x8xf32> -> vector<12x16xf32>
    %180 = tpu.concatenate %161, %162, %179 in 0 : vector<12x16xf32>, vector<12x16xf32>, vector<12x16xf32> -> vector<36x16xf32>
    %181 = tpu.concatenate %171, %180 in 1 : vector<36x16xf32>, vector<36x16xf32> -> vector<36x32xf32>
    %cst_69 = arith.constant dense<0.000000e+00> : vector<4x32xf32>
    %182 = tpu.matmul %159, %181, %cst_69 {dimension_numbers = #tpu.dot_dimension_numbers<[1], [0], [0], [1], [0, 0, 1, 1], [], []>} : vector<4x36xf32>, vector<36x32xf32>, vector<4x32xf32> -> vector<4x32xf32>
    %183 = vector.broadcast %160 : vector<4x1xf32> to vector<4x32xf32>
    %184 = arith.addf %182, %183 : vector<4x32xf32>
    %c0_70 = arith.constant 0 : index
    %c0_71 = arith.constant 0 : index
    %185 = vector.load %arg19[%c0_70, %c0_71] : memref<4x1xf32, #tpu.memory_space<vmem>>, vector<4x1xf32>
    %c0_72 = arith.constant 0 : index
    %c0_73 = arith.constant 0 : index
    %186 = vector.load %arg20[%c0_72, %c0_73] : memref<4x1xf32, #tpu.memory_space<vmem>>, vector<4x1xf32>
    %cst_74 = arith.constant dense<0.000000e+00> : vector<4xf32>
    %187 = vector.multi_reduction <add>, %184, %cst_74 [1] : vector<4x32xf32> to vector<4xf32>
    %188 = vector.shape_cast %187 : vector<4xf32> to vector<4x1xf32>
    %cst_75 = arith.constant 3.200000e+01 : f32
    %189 = vector.broadcast %cst_75 : f32 to vector<4x1xf32>
    %190 = arith.divf %188, %189 : vector<4x1xf32>
    %191 = vector.broadcast %190 : vector<4x1xf32> to vector<4x32xf32>
    %192 = arith.subf %184, %191 : vector<4x32xf32>
    %193 = arith.mulf %192, %192 : vector<4x32xf32>
    %cst_76 = arith.constant dense<0.000000e+00> : vector<4xf32>
    %194 = vector.multi_reduction <add>, %193, %cst_76 [1] : vector<4x32xf32> to vector<4xf32>
    %195 = vector.shape_cast %194 : vector<4xf32> to vector<4x1xf32>
    %cst_77 = arith.constant 3.200000e+01 : f32
    %196 = vector.broadcast %cst_77 : f32 to vector<4x1xf32>
    %197 = arith.divf %195, %196 : vector<4x1xf32>
    %cst_78 = arith.constant 9.99999974E-6 : f32
    %198 = vector.broadcast %cst_78 : f32 to vector<4x1xf32>
    %199 = arith.addf %197, %198 : vector<4x1xf32>
    %200 = math.rsqrt %199 : vector<4x1xf32>
    %201 = vector.broadcast %200 : vector<4x1xf32> to vector<4x32xf32>
    %202 = arith.mulf %192, %201 : vector<4x32xf32>
    %203 = vector.broadcast %185 : vector<4x1xf32> to vector<4x32xf32>
    %204 = arith.mulf %202, %203 : vector<4x32xf32>
    %205 = vector.broadcast %186 : vector<4x1xf32> to vector<4x32xf32>
    %206 = arith.addf %204, %205 : vector<4x32xf32>
    %cst_79 = arith.constant 0.000000e+00 : f32
    %207 = vector.broadcast %cst_79 : f32 to vector<4x32xf32>
    %208 = arith.maximumf %206, %207 : vector<4x32xf32>
    %c0_80 = arith.constant 0 : index
    %c0_81 = arith.constant 0 : index
    %209 = vector.load %arg21[%c0_80, %c0_81] : memref<4x12xf32, #tpu.memory_space<vmem>>, vector<4x12xf32>
    %c0_82 = arith.constant 0 : index
    %c0_83 = arith.constant 0 : index
    %210 = vector.load %arg22[%c0_82, %c0_83] : memref<4x1xf32, #tpu.memory_space<vmem>>, vector<4x1xf32>
    %211 = vector.extract_strided_slice %208 {offsets = [0, 0], sizes = [4, 16], strides = [1, 1]} : vector<4x32xf32> to vector<4x16xf32>
    %212 = vector.extract_strided_slice %208 {offsets = [0, 16], sizes = [4, 16], strides = [1, 1]} : vector<4x32xf32> to vector<4x16xf32>
    %cst_84 = arith.constant 0.000000e+00 : f32
    %213 = vector.broadcast %cst_84 : f32 to vector<4x1xf32>
    %214 = vector.extract_strided_slice %212 {offsets = [0, 0], sizes = [4, 8], strides = [1, 1]} : vector<4x16xf32> to vector<4x8xf32>
    %215 = vector.extract_strided_slice %214 {offsets = [0, 0], sizes = [4, 7], strides = [1, 1]} : vector<4x8xf32> to vector<4x7xf32>
    %216 = tpu.concatenate %213, %215 in 1 : vector<4x1xf32>, vector<4x7xf32> -> vector<4x8xf32>
    %217 = vector.extract_strided_slice %212 {offsets = [0, 8], sizes = [4, 8], strides = [1, 1]} : vector<4x16xf32> to vector<4x8xf32>
    %218 = vector.extract_strided_slice %217 {offsets = [0, 0], sizes = [4, 7], strides = [1, 1]} : vector<4x8xf32> to vector<4x7xf32>
    %219 = tpu.concatenate %213, %218 in 1 : vector<4x1xf32>, vector<4x7xf32> -> vector<4x8xf32>
    %220 = tpu.concatenate %216, %219 in 1 : vector<4x8xf32>, vector<4x8xf32> -> vector<4x16xf32>
    %221 = tpu.concatenate %220, %211, %212 in 0 : vector<4x16xf32>, vector<4x16xf32>, vector<4x16xf32> -> vector<12x16xf32>
    %cst_85 = arith.constant 0.000000e+00 : f32
    %222 = vector.broadcast %cst_85 : f32 to vector<4x1xf32>
    %223 = vector.extract_strided_slice %211 {offsets = [0, 0], sizes = [4, 8], strides = [1, 1]} : vector<4x16xf32> to vector<4x8xf32>
    %224 = vector.extract_strided_slice %223 {offsets = [0, 1], sizes = [4, 7], strides = [1, 1]} : vector<4x8xf32> to vector<4x7xf32>
    %225 = tpu.concatenate %224, %222 in 1 : vector<4x7xf32>, vector<4x1xf32> -> vector<4x8xf32>
    %226 = vector.extract_strided_slice %211 {offsets = [0, 8], sizes = [4, 8], strides = [1, 1]} : vector<4x16xf32> to vector<4x8xf32>
    %227 = vector.extract_strided_slice %226 {offsets = [0, 1], sizes = [4, 7], strides = [1, 1]} : vector<4x8xf32> to vector<4x7xf32>
    %228 = tpu.concatenate %227, %222 in 1 : vector<4x7xf32>, vector<4x1xf32> -> vector<4x8xf32>
    %229 = tpu.concatenate %225, %228 in 1 : vector<4x8xf32>, vector<4x8xf32> -> vector<4x16xf32>
    %230 = tpu.concatenate %211, %212, %229 in 0 : vector<4x16xf32>, vector<4x16xf32>, vector<4x16xf32> -> vector<12x16xf32>
    %231 = tpu.concatenate %221, %230 in 1 : vector<12x16xf32>, vector<12x16xf32> -> vector<12x32xf32>
    %cst_86 = arith.constant dense<0.000000e+00> : vector<4x32xf32>
    %232 = tpu.matmul %209, %231, %cst_86 {dimension_numbers = #tpu.dot_dimension_numbers<[1], [0], [0], [1], [0, 0, 1, 1], [], []>} : vector<4x12xf32>, vector<12x32xf32>, vector<4x32xf32> -> vector<4x32xf32>
    %233 = vector.broadcast %210 : vector<4x1xf32> to vector<4x32xf32>
    %234 = arith.addf %232, %233 : vector<4x32xf32>
    %c0_87 = arith.constant 0 : index
    %c0_88 = arith.constant 0 : index
    %235 = vector.load %arg23[%c0_87, %c0_88] : memref<4x36xf32, #tpu.memory_space<vmem>>, vector<4x36xf32>
    %c0_89 = arith.constant 0 : index
    %c0_90 = arith.constant 0 : index
    %236 = vector.load %arg24[%c0_89, %c0_90] : memref<4x1xf32, #tpu.memory_space<vmem>>, vector<4x1xf32>
    %237 = vector.extract_strided_slice %134 {offsets = [0, 0], sizes = [12, 16], strides = [1, 1]} : vector<12x32xf32> to vector<12x16xf32>
    %238 = vector.extract_strided_slice %134 {offsets = [0, 16], sizes = [12, 16], strides = [1, 1]} : vector<12x32xf32> to vector<12x16xf32>
    %cst_91 = arith.constant 0.000000e+00 : f32
    %239 = vector.broadcast %cst_91 : f32 to vector<12x1xf32>
    %240 = vector.extract_strided_slice %238 {offsets = [0, 0], sizes = [12, 8], strides = [1, 1]} : vector<12x16xf32> to vector<12x8xf32>
    %241 = vector.extract_strided_slice %240 {offsets = [0, 0], sizes = [12, 7], strides = [1, 1]} : vector<12x8xf32> to vector<12x7xf32>
    %242 = tpu.concatenate %239, %241 in 1 : vector<12x1xf32>, vector<12x7xf32> -> vector<12x8xf32>
    %243 = vector.extract_strided_slice %238 {offsets = [0, 8], sizes = [12, 8], strides = [1, 1]} : vector<12x16xf32> to vector<12x8xf32>
    %244 = vector.extract_strided_slice %243 {offsets = [0, 0], sizes = [12, 7], strides = [1, 1]} : vector<12x8xf32> to vector<12x7xf32>
    %245 = tpu.concatenate %239, %244 in 1 : vector<12x1xf32>, vector<12x7xf32> -> vector<12x8xf32>
    %246 = tpu.concatenate %242, %245 in 1 : vector<12x8xf32>, vector<12x8xf32> -> vector<12x16xf32>
    %247 = tpu.concatenate %246, %237, %238 in 0 : vector<12x16xf32>, vector<12x16xf32>, vector<12x16xf32> -> vector<36x16xf32>
    %cst_92 = arith.constant 0.000000e+00 : f32
    %248 = vector.broadcast %cst_92 : f32 to vector<12x1xf32>
    %249 = vector.extract_strided_slice %237 {offsets = [0, 0], sizes = [12, 8], strides = [1, 1]} : vector<12x16xf32> to vector<12x8xf32>
    %250 = vector.extract_strided_slice %249 {offsets = [0, 1], sizes = [12, 7], strides = [1, 1]} : vector<12x8xf32> to vector<12x7xf32>
    %251 = tpu.concatenate %250, %248 in 1 : vector<12x7xf32>, vector<12x1xf32> -> vector<12x8xf32>
    %252 = vector.extract_strided_slice %237 {offsets = [0, 8], sizes = [12, 8], strides = [1, 1]} : vector<12x16xf32> to vector<12x8xf32>
    %253 = vector.extract_strided_slice %252 {offsets = [0, 1], sizes = [12, 7], strides = [1, 1]} : vector<12x8xf32> to vector<12x7xf32>
    %254 = tpu.concatenate %253, %248 in 1 : vector<12x7xf32>, vector<12x1xf32> -> vector<12x8xf32>
    %255 = tpu.concatenate %251, %254 in 1 : vector<12x8xf32>, vector<12x8xf32> -> vector<12x16xf32>
    %256 = tpu.concatenate %237, %238, %255 in 0 : vector<12x16xf32>, vector<12x16xf32>, vector<12x16xf32> -> vector<36x16xf32>
    %257 = tpu.concatenate %247, %256 in 1 : vector<36x16xf32>, vector<36x16xf32> -> vector<36x32xf32>
    %cst_93 = arith.constant dense<0.000000e+00> : vector<4x32xf32>
    %258 = tpu.matmul %235, %257, %cst_93 {dimension_numbers = #tpu.dot_dimension_numbers<[1], [0], [0], [1], [0, 0, 1, 1], [], []>} : vector<4x36xf32>, vector<36x32xf32>, vector<4x32xf32> -> vector<4x32xf32>
    %259 = vector.broadcast %236 : vector<4x1xf32> to vector<4x32xf32>
    %260 = arith.addf %258, %259 : vector<4x32xf32>
    %c0_94 = arith.constant 0 : index
    %c0_95 = arith.constant 0 : index
    %261 = vector.load %arg25[%c0_94, %c0_95] : memref<4x1xf32, #tpu.memory_space<vmem>>, vector<4x1xf32>
    %c0_96 = arith.constant 0 : index
    %c0_97 = arith.constant 0 : index
    %262 = vector.load %arg26[%c0_96, %c0_97] : memref<4x1xf32, #tpu.memory_space<vmem>>, vector<4x1xf32>
    %cst_98 = arith.constant dense<0.000000e+00> : vector<4xf32>
    %263 = vector.multi_reduction <add>, %260, %cst_98 [1] : vector<4x32xf32> to vector<4xf32>
    %264 = vector.shape_cast %263 : vector<4xf32> to vector<4x1xf32>
    %cst_99 = arith.constant 3.200000e+01 : f32
    %265 = vector.broadcast %cst_99 : f32 to vector<4x1xf32>
    %266 = arith.divf %264, %265 : vector<4x1xf32>
    %267 = vector.broadcast %266 : vector<4x1xf32> to vector<4x32xf32>
    %268 = arith.subf %260, %267 : vector<4x32xf32>
    %269 = arith.mulf %268, %268 : vector<4x32xf32>
    %cst_100 = arith.constant dense<0.000000e+00> : vector<4xf32>
    %270 = vector.multi_reduction <add>, %269, %cst_100 [1] : vector<4x32xf32> to vector<4xf32>
    %271 = vector.shape_cast %270 : vector<4xf32> to vector<4x1xf32>
    %cst_101 = arith.constant 3.200000e+01 : f32
    %272 = vector.broadcast %cst_101 : f32 to vector<4x1xf32>
    %273 = arith.divf %271, %272 : vector<4x1xf32>
    %cst_102 = arith.constant 9.99999974E-6 : f32
    %274 = vector.broadcast %cst_102 : f32 to vector<4x1xf32>
    %275 = arith.addf %273, %274 : vector<4x1xf32>
    %276 = math.rsqrt %275 : vector<4x1xf32>
    %277 = vector.broadcast %276 : vector<4x1xf32> to vector<4x32xf32>
    %278 = arith.mulf %268, %277 : vector<4x32xf32>
    %279 = vector.broadcast %261 : vector<4x1xf32> to vector<4x32xf32>
    %280 = arith.mulf %278, %279 : vector<4x32xf32>
    %281 = vector.broadcast %262 : vector<4x1xf32> to vector<4x32xf32>
    %282 = arith.addf %280, %281 : vector<4x32xf32>
    %283 = arith.addf %234, %282 : vector<4x32xf32>
    %c0_103 = arith.constant 0 : index
    %c0_104 = arith.constant 0 : index
    %284 = vector.load %arg27[%c0_103, %c0_104] : memref<4x32xf32, #tpu.memory_space<vmem>>, vector<4x32xf32>
    tpu.vector_store %arg27[%c0_103, %c0_104], %283 {strides = array<i32>} : memref<4x32xf32, #tpu.memory_space<vmem>>, vector<4x32xf32>,
    return
  }
}

</mosaic_0001>

<bundles_post_ra>
// kernel: bridge_forward.1
= control target key start
LH: loop header
LB: loop body
LE: loop exit
PB: predicated region body
PF: predicated region fallthrough
CT: control target
= control target key end

     0   :  { %vm89_vm0 = vcmask 257024   ;;  %v1407_v2 = vmov 0   ;;  %s1408_s29 = smov 113   ;;  %v1410_v20 = vmov 0.0|0.0   ;;  %vm1411_vm1 = vmmov 0   ;;  %s1884_s0 = inlined_call_operand.vmem [shape: f32[4,32], index: 0, kind: input, shape index: {}]   ;;  %s1885_s1 = inlined_call_operand.vmem [shape: f32[4,1], index: 1, kind: input, shape index: {}]   ;;  %s1886_s2 = inlined_call_operand.vmem [shape: f32[4,1], index: 2, kind: input, shape index: {}]   ;;  %s1887_s4 = inlined_call_operand.vmem [shape: f32[8,1], index: 4, kind: input, shape index: {}]   ;;  %s1888_s3 = inlined_call_operand.vmem [shape: f32[8,12], index: 3, kind: input, shape index: {}]   ;;  %s1889_s5 = inlined_call_operand.vmem [shape: f32[8,1], index: 5, kind: input, shape index: {}]   ;;  %s1890_s6 = inlined_call_operand.vmem [shape: f32[8,1], index: 6, kind: input, shape index: {}]   ;;  %s1891_s9 = inlined_call_operand.vmem [shape: f32[8,12], index: 9, kind: input, shape index: {}]   ;;  %s1892_s10 = inlined_call_operand.vmem [shape: f32[8,1], index: 10, kind: input, shape index: {}]   ;;  %s1893_s7 = inlined_call_operand.vmem [shape: f32[8,24], index: 7, kind: input, shape index: {}]   ;;  %s1894_s11 = inlined_call_operand.vmem [shape: f32[8,1], index: 11, kind: input, shape index: {}]   ;;  %s1895_s12 = inlined_call_operand.vmem [shape: f32[8,1], index: 12, kind: input, shape index: {}]   ;;  %s1896_s14 = inlined_call_operand.vmem [shape: f32[8,1], index: 14, kind: input, shape index: {}]   ;;  %s1897_s8 = inlined_call_operand.vmem [shape: f32[8,1], index: 8, kind: input, shape index: {}]   ;;  %s1898_s13 = inlined_call_operand.vmem [shape: f32[16,8], index: 13, kind: input, shape index: {}]   ;;  %s1899_s16 = inlined_call_operand.vmem [shape: f32[12,1], index: 16, kind: input, shape index: {}]   ;;  %s1900_s15 = inlined_call_operand.vmem [shape: f32[12,1], index: 15, kind: input, shape index: {}]   ;;  %s1901_s18 = inlined_call_operand.vmem [shape: f32[4,1], index: 18, kind: input, shape index: {}]   ;;  %s1902_s17 = inlined_call_operand.vmem [shape: f32[4,36], index: 17, kind: input, shape index: {}]   ;;  %s1903_s19 = inlined_call_operand.vmem [shape: f32[4,1], index: 19, kind: input, shape index: {}]   ;;  %s1904_s20 = inlined_call_operand.vmem [shape: f32[4,1], index: 20, kind: input, shape index: {}]   ;;  %s1905_s24 = inlined_call_operand.vmem [shape: f32[4,1], index: 24, kind: input, shape index: {}]   ;;  %s1906_s21 = inlined_call_operand.vmem [shape: f32[4,12], index: 21, kind: input, shape index: {}]   ;;  %s1907_s23 = inlined_call_operand.vmem [shape: f32[4,36], index: 23, kind: input, shape index: {}]   ;;  %s1908_s25 = inlined_call_operand.vmem [shape: f32[4,1], index: 25, kind: input, shape index: {}]   ;;  %s1909_s26 = inlined_call_operand.vmem [shape: f32[4,1], index: 26, kind: input, shape index: {}]   ;;  %s1910_s22 = inlined_call_operand.vmem [shape: f32[4,1], index: 22, kind: input, shape index: {}]   ;;  %s1911_s27 = inlined_call_operand.vmem [shape: f32[4,32], index: 27, kind: output, shape index: {}]  }
   0x1   :  { %1912 = sst [smem:[#allocation2_spill]] %s1884_s0  ;;  %1336 = vset.pattern.permute.xlu1 %v1407_v2  ;;  %1337 = vset.pattern.permute.xlu0 %v1407_v2  ;;  %v1412_v21 = vmov 0.0   ;;  %vm123_vm2 = vcmask 7168   ;;  %vm133_vm3 = vcmask 64512   ;;  %vm139_vm4 = vcmask 1043456  }
   0x2   :  { %1913 = sst [smem:[#allocation3_spill]] %s1885_s1  ;;  %s1409_s1 = smov 105   ;;  %1295 = vmatprep.subr.bf16.mxu0 %v1410_v20  ;;  %1299 = vmatprep.subr.bf16.mxu1 %v1410_v20  ;;  %vm1415_vm5 = vmmov 1   ;;  %vm146_vm7 = vcmask 97280   ;;  %vm224_vm8 = vcmask 130048   ;;  %vm271_vm9 = vcmask 56320  }
   0x3   :  { %1914 = sst [smem:[#allocation4_spill]] %s1886_s2  ;;  %1238 = vmatprep.mubr.msk.f32.mxu0 %vm1411_vm1, %v1412_v21  ;;  %1247 = vmatprep.mubr.msk.f32.mxu1 %vm1411_vm1, %v1412_v21  ;;  %vm1598_vm6 = vmpackc.low %vm139_vm4, %vm1415_vm5  ;;  %vm287_vm10 = vcmask 195584   ;;  %vm593_vm11 = vcmask 261120   ;;  %vm748_vm12 = vcmask 293888  }
   0x4   :  { %1915 = sst [smem:[#allocation5_spill]] %s1887_s4 }
   0x5   :  { %1916 = sst [smem:[#allocation6_spill]] %s1888_s3 }
   0x6   :  { %1917 = sst [smem:[#allocation7_spill]] %s1889_s5  ;;  %s1925_s5 = sld [smem:[#allocation3_spill]] }
   0x7   :  { %1918 = sst [smem:[#allocation8_spill]] %s1890_s6  ;;  %s1413_s6 = smov 8  }
   0x8   :  { %1919 = sst [smem:[#allocation9_spill]] %s1891_s9  ;;  %s1927_s9 = sld [smem:[#allocation5_spill]] }
   0x9   :  { %1920 = sst [smem:[#allocation10_spill]] %s1892_s10  ;;  %s1930_s30 = sld [smem:[#allocation6_spill]] }
   0xa   :  { %1921 = sst [smem:[#allocation11_spill]] %s1893_s7  ;;  %s1924_s10 = sld [smem:[#allocation2_spill]] }
   0xb   :  { %1922 = sst [smem:[#allocation12_spill]] %s1894_s11  ;;  %s1931_s28 = sld [smem:[#allocation7_spill]] }
   0xc   :  { %1923 = sst [smem:[#allocation13_spill]] %s1895_s12  ;;  %v87_v3 = vld [vmem:[%s1925_s5] sm:$0xf]  ;;  %s1926_s11 = sld [smem:[#allocation4_spill]] }
   0xd   :  { %106 = vperm.xlu1 %1336, %v87_v3   ;;  %s1414_s12 = smov 112   ;;  %s1932_s2 = sld [smem:[#allocation8_spill]] }
   0xe   :  { %v118_v24 = vld [vmem:[%s1927_s9] sm:$0xff]  ;;  %s1933_s3 = sld [smem:[#allocation9_spill]]  ;;  %s1418_s7 = smov 1  }
   0xf   :  { %v117_v34 = vld [vmem:[%s1930_s30] sm:$0xff]  ;;  %s1417_s30 = smov 119   ;;  %s1419_s5 = smov 127  }
  0x10   :  { %v1564_v0 = vld [vmem:[%s1924_s10] sm:$0xf]  ;;  %s1416_s10 = smov 121   ;;  %s1935_s9 = sld [smem:[#allocation11_spill]] }
  0x11   :  { %v90_v1 = vsel %vm89_vm0, %v1564_v0, 0.0  ;;  %v222_v42 = vld [vmem:[%s1931_s28] sm:$0xff]  ;;  %v377_v45 = vrot.slane %v1564_v0, 4  ;;  %s1420_s28 = smov 16  }
  0x12   :  { %91 = vadd.xlane.f32.xlu0 %v90_v1  ;;  %v88_v4 = vld [vmem:[%s1926_s11] sm:$0xf]  ;;  %s1934_s11 = sld [smem:[#allocation10_spill]] }
  0x13   :  { %112 = vperm.xlu1 %1336, %v88_v4   ;;  %v223_v56 = vld [vmem:[%s1932_s2] sm:$0xff] }
  0x14   :  { %v361_v57 = vld [vmem:[%s1933_s3] sm:$0xff] }
  0x8c   :  { %v107_v13 = vpop.permute.xlu1 %106 }
  0x92   :  { %v113_v17 = vpop.permute.xlu1 %112 }
  0x9f   :  { %v92_v5 = vpop.xlane.xlu0 %91 }
  0xa0   :  { %v94_v6 = vmul.f32 0.03125, %v92_v5 }
  0xa2   :  { %v95_v7 = vsub.f32 %v1564_v0, %v94_v6 }
  0xa4   :  { %v96_v8 = vmul.f32 %v95_v7, %v95_v7 }
  0xa6   :  { %v97_v9 = vsel %vm89_vm0, %v96_v8, 0.0 }
  0xa7   :  { %98 = vadd.xlane.f32.xlu0 %v97_v9 }
 0x134   :  { %v99_v10 = vpop.xlane.xlu0 %98 }
 0x135   :  { %v100_v11 = vmul.f32 0.03125, %v99_v10 }
 0x137   :  { %v101_v12 = vadd.f32 1e-05, %v100_v11  ;;  %v362_v11 = vld [vmem:[%s1934_s11] sm:$0xff]  ;;  %s1937_s11 = sld [smem:[#allocation13_spill]] }
 0x139   :  { %1393 = vrsqrt.f32 %v101_v12 }
 0x143   :  { %v1394_v14 = vpop.eup %1393 }
 0x144   :  { %v103_v15 = vmul.f32 %v1394_v14, %v95_v7 }
 0x146   :  { %v109_v16 = vmul.f32 %v107_v13, %v103_v15 }
 0x148   :  { %v115_v18 = vadd.f32 %v113_v17, %v109_v16 }
 0x14a   :  { %v116_v19 = vmax.f32 %v115_v18, 0.0 }
 0x14c   :  { %120 = vrot.lane.b32.xlu1 %v116_v19, %s1408_s29  ;;  %125 = vrot.lane.b32.xlu0 %v116_v19, %s1409_s1  ;;  %v135_v29 = vrot.slane %v116_v19, 4 }
 0x150   :  { %368 = vrot.lane.b32.xlu0 %v1564_v0, %s1409_s1 }
 0x154   :  { %364 = vrot.lane.b32.xlu0 %v1564_v0, %s1408_s29 }
 0x1be   :  { %v126_v22 = vpop.permute.xlu0 %125  ;;  %v121_v25 = vpop.permute.xlu1 %120 }
 0x1bf   :  { %v128_v23 = vsel %vm123_vm2, 0.0, %v126_v22  ;;  %v124_v26 = vsel %vm123_vm2, 0.0, %v121_v25  ;;  %v252_v22 = vld [vmem:[%s1935_s9] sm:$0xff] }
 0x1c0   :  { %130 = vrot.lane.b32.xlu1 %v128_v23, %s1413_s6 }
 0x1c2   :  { %v369_v35 = vpop.permute.xlu0 %368 }
 0x1c3   :  { %v371_v36 = vsel %vm123_vm2, 0.0, %v369_v35 }
 0x1c4   :  { %137 = vrot.lane.b32.xlu1 %v116_v19, %s1414_s12  ;;  %373 = vrot.lane.b32.xlu0 %v371_v36, %s1413_s6  ;;  %v253_v36 = vld [vmem:[%s1897_s8] sm:$0xff] }
 0x1c6   :  { %v365_v43 = vpop.permute.xlu0 %364 }
 0x1c7   :  { %v367_v44 = vsel %vm123_vm2, 0.0, %v365_v43 }
 0x1c8   :  { %143 = vperm.xlu1 %1336, %v118_v24   ;;  %379 = vrot.lane.b32.xlu0 %v1564_v0, %s1414_s12 }
 0x232   :  { %v131_v27 = vpop.permute.xlu1 %130 }
 0x233   :  { %v134_v28 = vsel %vm133_vm3, %v124_v26, %v131_v27 }
 0x234   :  { %v140_v31 = vsel %vm139_vm4, %v134_v28, %v135_v29  ;;  %v463_v28 = vld [vmem:[%s1937_s11] sm:$0xff] }
 0x235   :  { %v578_v29 = vld [vmem:[%s1896_s14] sm:$0xff] }
 0x236   :  { %v138_v30 = vpop.permute.xlu1 %137  ;;  %v374_v46 = vpop.permute.xlu0 %373 }
 0x237   :  { %v1296_v33 = vpack.c.bf16 %v138_v30, %v140_v31  ;;  %v376_v47 = vsel %vm133_vm3, %v367_v44, %v374_v46 }
 0x238   :  { %v381_v48 = vsel %vm139_vm4, %v376_v47, %v377_v45 }
 0x239   :  { %1298 = vmatpush3.bf16.msk.msra.mxu0 %vm1598_vm6, %v1296_v33 }
 0x23a   :  { %1302 = vmatprep.subr.bf16.mxu0 %v1410_v20  ;;  %v380_v49 = vpop.permute.xlu0 %379 }
 0x23b   :  { %v1303_v50 = vpack.c.bf16 %v380_v49, %v381_v48 }
 0x23c   :  { %1239 = vmatmul.mubr.msk.f32.vlgmr.msra.gmra.mrb[0].mxu0 %vm146_vm7, %v117_v34 }
 0x23d   :  { %1254 = vmatprep.mubr.msk.f32.mxu0 %vm1411_vm1, %v1412_v21  ;;  %1305 = vmatpush3.bf16.msk.msra.mxu0 %vm1598_vm6, %v1303_v50 }
 0x240   :  { %1255 = vmatmul.mubr.msk.f32.vlgmr.msra.gmra.mrb[2].mxu0 %vm146_vm7, %v361_v57 }
 0x247   :  { %v144_v37 = vpop.permute.xlu1 %143 }
 0x30f   :  { %v218_v38 = vpop.f32.mrb[0].mxu0 }
 0x310   :  { %v219_v39 = vadd.f32 %v218_v38, %v144_v37  ;;  %v1240_v40 = vpop.f32.mrb[1].mxu0  ;;  %v490_v37 = vld [vmem:[%s1898_s13] sm:$0xff] }
 0x311   :  { %1259 = vmatprep.mubr.msk.f32.mxu0 %vm133_vm3, %v490_v37 }
 0x312   :  { %v225_v41 = vsel %vm224_vm8, %v219_v39, 0.0 }
 0x313   :  { %226 = vadd.xlane.f32.xlu1 %v225_v41  ;;  %v458_v5 = vpop.f32.mrb[2].mxu0 }
 0x314   :  { %v1256_v6 = vpop.f32.mrb[3].mxu0 }
 0x324   :  { %241 = vperm.xlu1 %1336, %v222_v42  }
 0x3a0   :  { %v227_v51 = vpop.xlane.xlu1 %226 }
 0x3a1   :  { %v229_v52 = vmul.f32 0.0625, %v227_v51 }
 0x3a3   :  { %v230_v53 = vsub.f32 %v219_v39, %v229_v52  ;;  %v491_v52 = vld [vmem:[%s1898_s13 + $0x8] sm:$0xff] }
 0x3a4   :  { %v242_v63 = vpop.permute.xlu1 %241 }
 0x3a5   :  { %v231_v54 = vmul.f32 %v230_v53, %v230_v53 }
 0x3a7   :  { %v232_v55 = vsel %vm224_vm8, %v231_v54, 0.0 }
 0x3a8   :  { %233 = vadd.xlane.f32.xlu0 %v232_v55 }
 0x3be   :  { %247 = vperm.xlu0 %1337, %v223_v56  }
 0x435   :  { %v234_v58 = vpop.xlane.xlu0 %233 }
 0x436   :  { %v235_v59 = vmul.f32 0.0625, %v234_v58 }
 0x438   :  { %v236_v60 = vadd.f32 1e-05, %v235_v59 }
 0x43a   :  { %1395 = vrsqrt.f32 %v236_v60 }
 0x43d   :  { %v248_v1 = vpop.permute.xlu0 %247 }
 0x444   :  { %v1396_v61 = vpop.eup %1395 }
 0x445   :  { %v238_v62 = vmul.f32 %v1396_v61, %v230_v53 }
 0x447   :  { %v244_v2 = vmul.f32 %v242_v63, %v238_v62 }
 0x449   :  { %v250_v3 = vadd.f32 %v248_v1, %v244_v2 }
 0x44b   :  { %v251_v4 = vmax.f32 %v250_v3, 0.0 }
 0x44d   :  { %259 = vrot.lane.b32.xlu1 %v251_v4, %s1416_s10 }
 0x451   :  { %273 = vrot.lane.b32.xlu1 %v251_v4, %s1417_s30 }
 0x455   :  { %255 = vrot.lane.b32.xlu1 %v251_v4, %s1418_s7  ;;  %s1936_s7 = sld [smem:[#allocation12_spill]] }
 0x45b   :  { %v462_v27 = vld [vmem:[%s1936_s7] sm:$0xff] }
 0x4bf   :  { %v260_v7 = vpop.permute.xlu1 %259 }
 0x4c0   :  { %v262_v8 = vsel %vm123_vm2, 0.0, %v260_v7 }
 0x4c1   :  { %264 = vrot.lane.b32.xlu1 %v262_v8, %s1413_s6 }
 0x4c3   :  { %v274_v9 = vpop.permute.xlu1 %273 }
 0x4c4   :  { %v276_v10 = vsel %vm271_vm9, %v274_v9, 0.0  ;;  %v591_v9 = vld [vmem:[%s1899_s16] sm:$0xff] }
 0x4c5   :  { %268 = vrot.lane.b32.xlu1 %v251_v4, %s1419_s5 }
 0x4c7   :  { %v256_v12 = vpop.permute.xlu1 %255 }
 0x4c8   :  { %v258_v13 = vsel %vm123_vm2, 0.0, %v256_v12  ;;  %v592_v12 = vld [vmem:[%s1899_s16 + $0x8] sm:$0xf] }
 0x4c9   :  { %278 = vrot.lane.b32.xlu1 %v276_v10, %s1413_s6  ;;  %v590_v10 = vld [vmem:[%s1900_s15 + $0x8] sm:$0xf] }
 0x4cd   :  { %384 = vperm.xlu1 %1336, %v362_v11   ;;  %v589_v11 = vld [vmem:[%s1900_s15] sm:$0xff] }
 0x533   :  { %v265_v14 = vpop.permute.xlu1 %264 }
 0x534   :  { %v267_v15 = vsel %vm133_vm3, %v258_v13, %v265_v14 }
 0x535   :  { %v1300_v16 = vpack.c.bf16 %v251_v4, %v267_v15 }
 0x537   :  { %1301 = vmatpush3.bf16.msra.mxu1 %v1300_v16  ;;  %v269_v17 = vpop.permute.xlu1 %268 }
 0x538   :  { %1245 = vmatprep.subr.mxu1 %v1412_v21  ;;  %v272_v18 = vsel %vm271_vm9, %v269_v17, 0.0 }
 0x53b   :  { %v279_v19 = vpop.permute.xlu1 %278 }
 0x53c   :  { %v281_v23 = vsel %vm133_vm3, %v272_v18, %v279_v19 }
 0x53d   :  { %1246 = vmatpush3.msra.mxu1 %v281_v23 }
 0x53e   :  { %1248 = vmatmul.mubr.msk.f32.vlgmr.msra.gmra.mrb[0].mxu1 %vm287_vm10, %v252_v22  ;;  %1312 = vmatprep.subr.bf16.mxu1 %v1410_v20 }
 0x53f   :  { %1279 = vmatprep.mubr.msk.f32.mxu1 %vm1411_vm1, %v1412_v21 }
 0x54c   :  { %v385_v24 = vpop.permute.xlu1 %384 }
 0x54d   :  { %v459_v25 = vadd.f32 %v458_v5, %v385_v24 }
 0x54f   :  { %v464_v26 = vsel %vm224_vm8, %v459_v25, 0.0 }
 0x550   :  { %465 = vadd.xlane.f32.xlu1 %v464_v26 }
 0x561   :  { %479 = vperm.xlu1 %1336, %v462_v27  }
 0x565   :  { %485 = vperm.xlu1 %1336, %v463_v28  }
 0x569   :  { %581 = vperm.xlu1 %1336, %v578_v29  }
 0x5dd   :  { %v466_v30 = vpop.xlane.xlu1 %465 }
 0x5de   :  { %v467_v31 = vmul.f32 0.0625, %v466_v30 }
 0x5e0   :  { %v468_v33 = vsub.f32 %v459_v25, %v467_v31 }
 0x5e1   :  { %v480_v43 = vpop.permute.xlu1 %479 }
 0x5e2   :  { %v469_v34 = vmul.f32 %v468_v33, %v468_v33 }
 0x5e4   :  { %v470_v35 = vsel %vm224_vm8, %v469_v34, 0.0 }
 0x5e5   :  { %471 = vadd.xlane.f32.xlu0 %v470_v35  ;;  %v486_v48 = vpop.permute.xlu1 %485 }
 0x5e9   :  { %v582_v55 = vpop.permute.xlu1 %581 }
 0x5fb   :  { %284 = vperm.xlu0 %1337, %v253_v36  }
 0x611   :  { %v357_v38 = vpop.f32.mrb[0].mxu1 }
 0x612   :  { %v1249_v39 = vpop.f32.mrb[1].mxu1 }
 0x672   :  { %v472_v40 = vpop.xlane.xlu0 %471 }
 0x673   :  { %v473_v41 = vmul.f32 0.0625, %v472_v40 }
 0x675   :  { %v474_v42 = vadd.f32 1e-05, %v473_v41 }
 0x677   :  { %1397 = vrsqrt.f32 %v474_v42 }
 0x67a   :  { %v285_v46 = vpop.permute.xlu0 %284 }
 0x67b   :  { %v358_v49 = vadd.f32 %v357_v38, %v285_v46 }
 0x681   :  { %v1398_v44 = vpop.eup %1397 }
 0x682   :  { %v476_v45 = vmul.f32 %v1398_v44, %v468_v33 }
 0x684   :  { %v482_v47 = vmul.f32 %v480_v43, %v476_v45 }
 0x686   :  { %v488_v50 = vadd.f32 %v486_v48, %v482_v47 }
 0x688   :  { %v489_v51 = vadd.f32 %v488_v50, %v358_v49 }
 0x68a   :  { %1257 = vmatprep.subr.mxu0 %v489_v51 }
 0x68b   :  { %1258 = vmatpush3.msra.mxu0 %v489_v51 }
 0x68c   :  { %1260 = vmatmul.mubr.msk.f32.vlgmr.msra.gmra.mrb[4].mxu0 %vm133_vm3, %v491_v52  ;;  %1306 = vmatprep.subr.bf16.mxu0 %v1410_v20 }
 0x68d   :  { %1272 = vmatprep.mubr.msk.f32.mxu0 %vm1411_vm1, %v1412_v21 }
 0x75f   :  { %v1261_v53 = vpop.f32.mrb[4].mxu0 }
 0x760   :  { %574 = vrot.lane.b32.xlu1 %v1261_v53, %s1420_s28  ;;  %v564_v54 = vpop.f32.mrb[5].mxu0  ;;  %v647_v53 = vld [vmem:[%s1901_s18] sm:$0xf] }
 0x7d2   :  { %v575_v56 = vpop.permute.xlu1 %574 }
 0x7d3   :  { %v577_v57 = vsel %vm224_vm8, %v564_v54, %v575_v56 }
 0x7d4   :  { %v584_v58 = vadd.f32 %v582_v55, %v577_v57 }
 0x7d6   :  { %v1680_v59 = vrot.slane %v584_v58, 4 }
 0x7d8   :  { %v597_v60 = vsel %vm89_vm0, %v1680_v59, 0.0  ;;  %v1687_v61 = vsel %vm139_vm4, %v1564_v0, %v1680_v59 }
 0x7d9   :  { %598 = vadd.xlane.f32.xlu0 %v597_v60  ;;  %v594_v62 = vsel %vm593_vm11, %v1687_v61, 0.0 }
 0x7da   :  { %595 = vadd.xlane.f32.xlu1 %v594_v62 }
 0x866   :  { %v599_v63 = vpop.xlane.xlu0 %598 }
 0x867   :  { %v601_v1 = vmul.f32 0.03125, %v599_v63  ;;  %v596_v2 = vpop.xlane.xlu1 %595 }
 0x868   :  { %v600_v3 = vmul.f32 0.03125, %v596_v2 }
 0x869   :  { %v603_v4 = vsub.f32 %v1680_v59, %v601_v1 }
 0x86a   :  { %v602_v5 = vsub.f32 %v1687_v61, %v600_v3 }
 0x86b   :  { %v605_v6 = vmul.f32 %v603_v4, %v603_v4 }
 0x86c   :  { %v604_v7 = vmul.f32 %v602_v5, %v602_v5 }
 0x86d   :  { %v609_v8 = vsel %vm89_vm0, %v605_v6, 0.0 }
 0x86e   :  { %610 = vadd.xlane.f32.xlu1 %v609_v8  ;;  %v606_v0 = vsel %vm593_vm11, %v604_v7, 0.0 }
 0x86f   :  { %607 = vadd.xlane.f32.xlu0 %v606_v0 }
 0x87f   :  { %634 = vperm.xlu1 %1336, %v591_v9  }
 0x883   :  { %627 = vperm.xlu1 %1336, %v590_v10  }
 0x885   :  { %622 = vperm.xlu0 %1337, %v589_v11  }
 0x889   :  { %639 = vperm.xlu0 %1337, %v592_v12  }
 0x8fb   :  { %v611_v13 = vpop.xlane.xlu1 %610 }
 0x8fc   :  { %v613_v14 = vmul.f32 0.03125, %v611_v13  ;;  %v608_v15 = vpop.xlane.xlu0 %607 }
 0x8fd   :  { %v612_v16 = vmul.f32 0.03125, %v608_v15 }
 0x8fe   :  { %v615_v17 = vadd.f32 1e-05, %v613_v14 }
 0x8ff   :  { %v614_v18 = vadd.f32 1e-05, %v612_v16  ;;  %v635_v19 = vpop.permute.xlu1 %634 }
 0x900   :  { %1399 = vrsqrt.f32 %v615_v17 }
 0x901   :  { %1401 = vrsqrt.f32 %v614_v18 }
 0x903   :  { %v628_v26 = vpop.permute.xlu1 %627 }
 0x904   :  { %v623_v22 = vpop.permute.xlu0 %622 }
 0x908   :  { %v640_v30 = vpop.permute.xlu0 %639 }
 0x90a   :  { %v1400_v23 = vpop.eup %1399 }
 0x90b   :  { %v1402_v24 = vpop.eup %1401  ;;  %v619_v25 = vmul.f32 %v1400_v23, %v603_v4 }
 0x90c   :  { %v618_v27 = vmul.f32 %v1402_v24, %v602_v5 }
 0x90d   :  { %v631_v28 = vmul.f32 %v628_v26, %v619_v25 }
 0x90e   :  { %v630_v29 = vmul.f32 %v623_v22, %v618_v27 }
 0x90f   :  { %v643_v31 = vadd.f32 %v640_v30, %v631_v28  ;;  %v646_v30 = vld [vmem:[%s1902_s17] sm:$0xf] }
 0x910   :  { %v642_v33 = vadd.f32 %v635_v19, %v630_v29 }
 0x911   :  { %v645_v34 = vmax.f32 %v643_v31, 0.0 }
 0x912   :  { %v644_v35 = vmax.f32 %v642_v33, 0.0 }
 0x913   :  { %698 = vrot.lane.b32.xlu0 %v645_v34, %s1417_s30  ;;  %v677_v38 = vrot.slane %v645_v34, 4 }
 0x914   :  { %696 = vrot.lane.b32.xlu1 %v644_v35, %s1417_s30  ;;  %v676_v36 = vrot.slane %v644_v35, 4  ;;  %v1338_v37 = vpack.i.bf16 %v644_v35, %v645_v34 }
 0x916   :  { %v678_v39 = vsel %vm139_vm4, %v676_v36, %v677_v38  ;;  %v825_v38 = vld [vmem:[%s1903_s19] sm:$0xf] }
 0x917   :  { %714 = vrot.lane.b32.xlu0 %v676_v36, %s1414_s12 }
 0x918   :  { %1339 = vrot.lane.b32.xlu1 %v1338_v37, %s1409_s1 }
 0x91c   :  { %688 = vrot.lane.b32.xlu1 %v644_v35, %s1419_s5 }
 0x920   :  { %716 = vrot.lane.b32.xlu1 %v678_v39, %s1414_s12 }
 0x985   :  { %v699_v40 = vpop.permute.xlu0 %698 }
 0x986   :  { %v703_v41 = vsel %vm271_vm9, %v699_v40, 0.0  ;;  %v697_v42 = vpop.permute.xlu1 %696 }
 0x987   :  { %v702_v43 = vsel %vm271_vm9, %v697_v42, 0.0  ;;  %708 = vrot.lane.b32.xlu1 %v703_v41, %s1413_s6 }
 0x988   :  { %706 = vrot.lane.b32.xlu0 %v702_v43, %s1413_s6 }
 0x989   :  { %v715_v47 = vpop.permute.xlu0 %714 }
 0x98a   :  { %v1340_v44 = vpop.permute.xlu1 %1339  ;;  %v719_v51 = vsel %vm139_vm4, %v645_v34, %v715_v47 }
 0x98b   :  { %v1342_v45 = vunpack.i.h.bf16 %v1340_v44  ;;  %v1341_v46 = vunpack.i.l.bf16 %v1340_v44  ;;  %v1353_v52 = vpack.i.bf16 %v719_v51, %v644_v35  ;;  %v826_v44 = vld [vmem:[%s1904_s20] sm:$0xf] }
 0x98c   :  { %690 = vrot.lane.b32.xlu0 %v645_v34, %s1419_s5 }
 0x98d   :  { %v664_v48 = vsel %vm123_vm2, 0.0, %v1342_v45  ;;  %v665_v49 = vsel %vm123_vm2, 0.0, %v1341_v46 }
 0x98e   :  { %v1348_v50 = vpack.i.bf16 %v664_v48, %v665_v49  ;;  %v689_v54 = vpop.permute.xlu1 %688 }
 0x98f   :  { %v694_v55 = vsel %vm271_vm9, %v689_v54, 0.0 }
 0x990   :  { %1344 = vrot.lane.b32.xlu0 %v1338_v37, %s1408_s29  ;;  %1349 = vrot.lane.b32.xlu1 %v1348_v50, %s1413_s6 }
 0x992   :  { %v717_v56 = vpop.permute.xlu1 %716 }
 0x994   :  { %1354 = vrot.lane.b32.xlu0 %v1353_v52, %s1420_s28  ;;  %681 = vrot.lane.b32.xlu1 %v644_v35, %s1414_s12 }
 0x998   :  { %683 = vrot.lane.b32.xlu1 %v645_v34, %s1414_s12 }
 0x99c   :  { %745 = vperm.xlu1 %1336, %v647_v53  }
 0x9f9   :  { %v709_v62 = vpop.permute.xlu1 %708 }
 0x9fa   :  { %v707_v57 = vpop.permute.xlu0 %706 }
 0x9fb   :  { %v712_v58 = vsel %vm133_vm3, %v694_v55, %v707_v57  ;;  %v1779_v57 = vrot.slane %v1687_v61, 4 }
 0x9fc   :  { %v1358_v60 = vpack.i.bf16 %v712_v58, %v717_v56 }
 0x9fe   :  { %v691_v63 = vpop.permute.xlu0 %690  ;;  %1359 = vrot.lane.b32.xlu0 %v1358_v60, %s1420_s28 }
 0x9ff   :  { %v695_v1 = vsel %vm271_vm9, %v691_v63, 0.0 }
 0xa00   :  { %v713_v2 = vsel %vm133_vm3, %v695_v1, %v709_v62 }
 0xa02   :  { %v1345_v3 = vpop.permute.xlu0 %1344  ;;  %731 = vrot.lane.b32.xlu0 %v713_v2, %s1420_s28  ;;  %v1350_v4 = vpop.permute.xlu1 %1349 }
 0xa03   :  { %v1347_v5 = vunpack.i.h.bf16 %v1345_v3  ;;  %v1346_v6 = vunpack.i.l.bf16 %v1345_v3  ;;  %v1351_v7 = vunpack.i.l.bf16 %v1350_v4  ;;  %v1352_v8 = vunpack.i.h.bf16 %v1350_v4 }
 0xa04   :  { %v1013_v3 = vrot.slane %v1680_v59, 4 }
 0xa05   :  { %v656_v0 = vsel %vm123_vm2, 0.0, %v1347_v5  ;;  %v657_v9 = vsel %vm123_vm2, 0.0, %v1346_v6 }
 0xa06   :  { %v675_v10 = vsel %vm133_vm3, %v657_v9, %v1351_v7  ;;  %v1355_v11 = vpop.permute.xlu0 %1354  ;;  %v674_v15 = vsel %vm133_vm3, %v656_v0, %v1352_v8  ;;  %v682_v24 = vpop.permute.xlu1 %681  ;;  %v1801_v8 = vsel %vm139_vm4, %v1779_v57, %v1013_v3 }
 0xa07   :  { %v1357_v12 = vunpack.i.h.bf16 %v1355_v11  ;;  %v1356_v13 = vunpack.i.l.bf16 %v1355_v11  ;;  %v687_v14 = vsel %vm139_vm4, %v675_v10, %v676_v36 }
 0xa09   :  { %v738_v16 = vsel %vm224_vm8, %v674_v15, %v1356_v13  ;;  %v739_v17 = vsel %vm224_vm8, %v687_v14, %v1357_v12 }
 0xa0a   :  { %v1307_v18 = vpack.c.bf16 %v739_v17, %v738_v16  ;;  %v684_v29 = vpop.permute.xlu1 %683 }
 0xa0c   :  { %1308 = vmatpush3.bf16.msra.mxu0 %v1307_v18 }
 0xa0d   :  { %1309 = vmatprep.subr.bf16.mxu0 %v1410_v20 }
 0xa1b   :  { %v746_v33 = vpop.permute.xlu1 %745 }
 0xa70   :  { %v1360_v19 = vpop.permute.xlu0 %1359 }
 0xa71   :  { %v1362_v22 = vunpack.i.h.bf16 %v1360_v19  ;;  %v1361_v23 = vunpack.i.l.bf16 %v1360_v19 }
 0xa73   :  { %v740_v25 = vsel %vm224_vm8, %v678_v39, %v1361_v23  ;;  %v741_v26 = vsel %vm224_vm8, %v682_v24, %v1362_v22 }
 0xa74   :  { %v1310_v27 = vpack.c.bf16 %v741_v26, %v740_v25  ;;  %v732_v28 = vpop.permute.xlu0 %731 }
 0xa75   :  { %v742_v31 = vsel %vm224_vm8, %v684_v29, %v732_v28 }
 0xa76   :  { %1311 = vmatpush3.bf16.msra.mxu0 %v1310_v27 }
 0xa77   :  { %1270 = vmatprep.subr.mxu0 %v1412_v21 }
 0xa7a   :  { %1271 = vmatpush3.msk.msra.mxu0 %vm139_vm4, %v742_v31 }
 0xa7b   :  { %1273 = vmatmul.mubr.msk.f32.vlgmr.msra.gmra.mrb[6].mxu0 %vm748_vm12, %v646_v30 }
 0xb4e   :  { %v821_v34 = vpop.f32.mrb[6].mxu0 }
 0xb4f   :  { %v822_v35 = vadd.f32 %v821_v34, %v746_v33  ;;  %v1274_v36 = vpop.f32.mrb[7].mxu0 }
 0xb51   :  { %v827_v37 = vsel %vm89_vm0, %v822_v35, 0.0 }
 0xb52   :  { %828 = vadd.xlane.f32.xlu0 %v827_v37 }
 0xb68   :  { %842 = vperm.xlu0 %1337, %v825_v38  }
 0xbdf   :  { %v829_v39 = vpop.xlane.xlu0 %828 }
 0xbe0   :  { %v830_v40 = vmul.f32 0.03125, %v829_v39 }
 0xbe2   :  { %v831_v41 = vsub.f32 %v822_v35, %v830_v40  ;;  %v984_v35 = vld [vmem:[%s1905_s24] sm:$0xf] }
 0xbe4   :  { %v832_v42 = vmul.f32 %v831_v41, %v831_v41 }
 0xbe6   :  { %v833_v43 = vsel %vm89_vm0, %v832_v42, 0.0 }
 0xbe7   :  { %834 = vadd.xlane.f32.xlu1 %v833_v43  ;;  %v843_v50 = vpop.permute.xlu0 %842 }
 0xbf8   :  { %848 = vperm.xlu1 %1336, %v826_v44  }
 0xbfc   :  { %1032 = vrot.lane.b32.xlu1 %v1687_v61, %s1417_s30 }
 0xc74   :  { %v835_v45 = vpop.xlane.xlu1 %834 }
 0xc75   :  { %v836_v46 = vmul.f32 0.03125, %v835_v45 }
 0xc77   :  { %v837_v47 = vadd.f32 1e-05, %v836_v46 }
 0xc78   :  { %v849_v52 = vpop.permute.xlu1 %848 }
 0xc79   :  { %1403 = vrsqrt.f32 %v837_v47 }
 0xc7c   :  { %v1033_v58 = vpop.permute.xlu1 %1032 }
 0xc7d   :  { %v1038_v60 = vsel %vm271_vm9, %v1033_v58, 0.0 }
 0xc83   :  { %v1404_v48 = vpop.eup %1403 }
 0xc84   :  { %v839_v49 = vmul.f32 %v1404_v48, %v831_v41 }
 0xc86   :  { %v845_v51 = vmul.f32 %v843_v50, %v839_v49 }
 0xc88   :  { %v851_v53 = vadd.f32 %v849_v52, %v845_v51 }
 0xc8a   :  { %v1763_v54 = vmax.f32 %v851_v53, 0.0 }
 0xc8c   :  { %879 = vrot.lane.b32.xlu0 %v1763_v54, %s1417_s30  ;;  %v1363_v55 = vpack.i.bf16 %v1680_v59, %v1763_v54  ;;  %v869_v56 = vrot.slane %v1763_v54, 4 }
 0xc8e   :  { %1364 = vrot.lane.b32.xlu1 %v1363_v55, %s1409_s1 }
 0xc90   :  { %1034 = vrot.lane.b32.xlu0 %v1680_v59, %s1417_s30 }
 0xc94   :  { %875 = vrot.lane.b32.xlu0 %v1763_v54, %s1419_s5 }
 0xc98   :  { %888 = vrot.lane.b32.xlu0 %v869_v56, %s1414_s12 }
 0xc9c   :  { %1050 = vrot.lane.b32.xlu0 %v1779_v57, %s1414_s12 }
 0xca0   :  { %1042 = vrot.lane.b32.xlu0 %v1038_v60, %s1413_s6 }
 0xca4   :  { %1026 = vrot.lane.b32.xlu0 %v1680_v59, %s1419_s5 }
 0xca8   :  { %1369 = vrot.lane.b32.xlu0 %v1363_v55, %s1408_s29 }
 0xcac   :  { %871 = vrot.lane.b32.xlu0 %v1763_v54, %s1414_s12 }
 0xcb0   :  { %986 = vrot.lane.b32.xlu0 %v1687_v61, %s1408_s29 }
 0xcfe   :  { %v880_v62 = vpop.permute.xlu0 %879 }
 0xcff   :  { %v882_v63 = vsel %vm271_vm9, %v880_v62, 0.0 }
 0xd00   :  { %884 = vrot.lane.b32.xlu1 %v882_v63, %s1413_s6  ;;  %v1365_v4 = vpop.permute.xlu1 %1364 }
 0xd01   :  { %v1367_v6 = vunpack.i.h.bf16 %v1365_v4  ;;  %v1366_v7 = vunpack.i.l.bf16 %v1365_v4 }
 0xd02   :  { %v1035_v1 = vpop.permute.xlu0 %1034 }
 0xd03   :  { %v1001_v9 = vsel %vm123_vm2, 0.0, %v1367_v6  ;;  %v863_v10 = vsel %vm123_vm2, 0.0, %v1366_v7  ;;  %v1039_v11 = vsel %vm271_vm9, %v1035_v1, 0.0 }
 0xd04   :  { %994 = vrot.lane.b32.xlu1 %v1687_v61, %s1409_s1  ;;  %v1373_v14 = vpack.i.bf16 %v1001_v9, %v863_v10 }
 0xd06   :  { %v876_v2 = vpop.permute.xlu0 %875 }
 0xd07   :  { %v878_v15 = vsel %vm271_vm9, %v876_v2, 0.0 }
 0xd08   :  { %1024 = vrot.lane.b32.xlu1 %v1687_v61, %s1419_s5 }
 0xd0a   :  { %v889_v5 = vpop.permute.xlu0 %888 }
 0xd0b   :  { %v891_v17 = vsel %vm139_vm4, %v1763_v54, %v889_v5 }
 0xd0c   :  { %1052 = vrot.lane.b32.xlu1 %v1801_v8, %s1414_s12 }
 0xd0e   :  { %v1051_v0 = vpop.permute.xlu0 %1050 }
 0xd0f   :  { %v1055_v12 = vsel %vm139_vm4, %v1680_v59, %v1051_v0 }
 0xd10   :  { %v1383_v13 = vpack.i.bf16 %v1055_v12, %v1687_v61  ;;  %1044 = vrot.lane.b32.xlu1 %v1039_v11, %s1413_s6  ;;  %v983_v11 = vld [vmem:[%s1907_s23] sm:$0xf] }
 0xd12   :  { %1384 = vrot.lane.b32.xlu0 %v1383_v13, %s1420_s28  ;;  %v1043_v23 = vpop.permute.xlu0 %1042 }
 0xd14   :  { %1374 = vrot.lane.b32.xlu1 %v1373_v14, %s1413_s6 }
 0xd16   :  { %v1027_v29 = vpop.permute.xlu0 %1026 }
 0xd17   :  { %v1031_v31 = vsel %vm271_vm9, %v1027_v29, 0.0 }
 0xd72   :  { %v885_v16 = vpop.permute.xlu1 %884 }
 0xd73   :  { %v887_v18 = vsel %vm133_vm3, %v878_v15, %v885_v16 }
 0xd74   :  { %v1378_v19 = vpack.i.bf16 %v887_v18, %v891_v17  ;;  %v1161_v18 = vld [vmem:[%s1909_s26] sm:$0xf] }
 0xd76   :  { %v995_v22 = vpop.permute.xlu1 %994  ;;  %1379 = vrot.lane.b32.xlu1 %v1378_v19, %s1420_s28 }
 0xd77   :  { %v1000_v24 = vsel %vm123_vm2, 0.0, %v995_v22 }
 0xd7a   :  { %v1025_v25 = vpop.permute.xlu1 %1024  ;;  %1004 = vrot.lane.b32.xlu1 %v1000_v24, %s1413_s6 }
 0xd7b   :  { %v1030_v26 = vsel %vm271_vm9, %v1025_v25, 0.0 }
 0xd7c   :  { %v1048_v28 = vsel %vm133_vm3, %v1030_v26, %v1043_v23  ;;  %v854_v26 = vld [vmem:[%s1910_s22] sm:$0xf] }
 0xd7e   :  { %v1053_v27 = vpop.permute.xlu1 %1052  ;;  %1017 = vrot.lane.b32.xlu1 %v1687_v61, %s1414_s12  ;;  %v1370_v61 = vpop.permute.xlu0 %1369 }
 0xd7f   :  { %v1388_v30 = vpack.i.bf16 %v1048_v28, %v1053_v27  ;;  %v1371_v38 = vunpack.i.l.bf16 %v1370_v61  ;;  %v1372_v39 = vunpack.i.h.bf16 %v1370_v61 }
 0xd81   :  { %1389 = vrot.lane.b32.xlu0 %v1388_v30, %s1420_s28  ;;  %v859_v43 = vsel %vm123_vm2, 0.0, %v1371_v38 }
 0xd82   :  { %v1045_v33 = vpop.permute.xlu1 %1044  ;;  %1019 = vrot.lane.b32.xlu1 %v1680_v59, %s1414_s12  ;;  %v872_v36 = vpop.permute.xlu0 %871  ;;  %v993_v59 = vsel %vm123_vm2, 0.0, %v1372_v39 }
 0xd83   :  { %v1049_v34 = vsel %vm133_vm3, %v1031_v31, %v1045_v33 }
 0xd85   :  { %1067 = vrot.lane.b32.xlu0 %v1049_v34, %s1420_s28 }
 0xd86   :  { %1081 = vperm.xlu1 %1336, %v984_v35   ;;  %v1375_v37 = vpop.permute.xlu1 %1374  ;;  %v987_v42 = vpop.permute.xlu0 %986 }
 0xd87   :  { %v1376_v40 = vunpack.i.l.bf16 %v1375_v37  ;;  %v1377_v41 = vunpack.i.h.bf16 %v1375_v37  ;;  %v992_v55 = vsel %vm123_vm2, 0.0, %v987_v42 }
 0xd89   :  { %v868_v44 = vsel %vm133_vm3, %v859_v43, %v1376_v40  ;;  %v1011_v45 = vsel %vm133_vm3, %v993_v59, %v1377_v41 }
 0xd8a   :  { %v1385_v47 = vpop.permute.xlu0 %1384  ;;  %v874_v50 = vsel %vm139_vm4, %v868_v44, %v869_v56  ;;  %v1023_v53 = vsel %vm139_vm4, %v1011_v45, %v1779_v57  ;;  %v853_v56 = vld [vmem:[%s1906_s21] sm:$0xf] }
 0xd8b   :  { %v1387_v58 = vunpack.i.h.bf16 %v1385_v47  ;;  %v1386_v60 = vunpack.i.l.bf16 %v1385_v47 }
 0xd8d   :  { %v1075_v54 = vsel %vm224_vm8, %v1023_v53, %v1387_v58 }
 0xde8   :  { %v1380_v46 = vpop.permute.xlu1 %1379 }
 0xde9   :  { %v1382_v48 = vunpack.i.h.bf16 %v1380_v46  ;;  %v1381_v49 = vunpack.i.l.bf16 %v1380_v46 }
 0xdeb   :  { %v900_v51 = vsel %vm224_vm8, %v874_v50, %v1381_v49  ;;  %v901_v52 = vsel %vm224_vm8, %v872_v36, %v1382_v48 }
 0xdec   :  { %v1313_v62 = vpack.c.bf16 %v901_v52, %v900_v51  ;;  %v1005_v63 = vpop.permute.xlu1 %1004 }
 0xded   :  { %v1010_v1 = vsel %vm133_vm3, %v992_v55, %v1005_v63 }
 0xdee   :  { %v1074_v2 = vsel %vm224_vm8, %v1010_v1, %v1386_v60  ;;  %1315 = vmatpush3.bf16.msk.msra.mxu1 %vm1598_vm6, %v1313_v62 }
 0xdef   :  { %v1317_v57 = vpack.c.bf16 %v1075_v54, %v1074_v2  ;;  %1316 = vmatprep.subr.bf16.mxu1 %v1410_v20 }
 0xdf0   :  { %v1018_v32 = vpop.permute.xlu1 %1017 }
 0xdf1   :  { %1280 = vmatmul.mubr.msk.f32.vlgmr.msra.gmra.mrb[2].mxu1 %vm146_vm7, %v853_v56 }
 0xdf2   :  { %1318 = vmatpush3.bf16.msra.mxu1 %v1317_v57  ;;  %1292 = vmatprep.mubr.msk.f32.mxu1 %vm1411_vm1, %v1412_v21 }
 0xdf3   :  { %v1390_v3 = vpop.permute.xlu0 %1389  ;;  %1319 = vmatprep.subr.bf16.mxu1 %v1410_v20 }
 0xdf4   :  { %v1392_v4 = vunpack.i.h.bf16 %v1390_v3  ;;  %v1391_v5 = vunpack.i.l.bf16 %v1390_v3  ;;  %v1020_v10 = vpop.permute.xlu1 %1019 }
 0xdf6   :  { %v1077_v6 = vsel %vm224_vm8, %v1018_v32, %v1392_v4  ;;  %v1076_v7 = vsel %vm224_vm8, %v1801_v8, %v1391_v5 }
 0xdf7   :  { %v1320_v0 = vpack.c.bf16 %v1077_v6, %v1076_v7  ;;  %v1068_v9 = vpop.permute.xlu0 %1067 }
 0xdf8   :  { %v1078_v20 = vsel %vm224_vm8, %v1020_v10, %v1068_v9 }
 0xdf9   :  { %1321 = vmatpush3.bf16.msra.mxu1 %v1320_v0 }
 0xdfa   :  { %1290 = vmatprep.subr.mxu1 %v1412_v21  ;;  %v1160_v21 = vld [vmem:[%s1908_s25] sm:$0xf] }
 0xdfd   :  { %1291 = vmatpush3.msk.msra.mxu1 %vm139_vm4, %v1078_v20 }
 0xdfe   :  { %1293 = vmatmul.mubr.msk.f32.vlgmr.msra.gmra.mrb[4].mxu1 %vm748_vm12, %v983_v11 }
 0xe05   :  { %v1082_v14 = vpop.permute.xlu1 %1081 }
 0xec4   :  { %v979_v12 = vpop.f32.mrb[2].mxu1 }
 0xec5   :  { %v1281_v13 = vpop.f32.mrb[3].mxu1 }
 0xed1   :  { %v1156_v8 = vpop.f32.mrb[4].mxu1 }
 0xed2   :  { %v1157_v15 = vadd.f32 %v1156_v8, %v1082_v14  ;;  %v1294_v16 = vpop.f32.mrb[5].mxu1 }
 0xed4   :  { %v1162_v17 = vsel %vm89_vm0, %v1157_v15, 0.0 }
 0xed5   :  { %1163 = vadd.xlane.f32.xlu0 %v1162_v17 }
 0xeeb   :  { %1177 = vperm.xlu0 %1337, %v1160_v21  }
 0xeef   :  { %1183 = vperm.xlu0 %1337, %v1161_v18  }
 0xf62   :  { %v1164_v19 = vpop.xlane.xlu0 %1163 }
 0xf63   :  { %v1165_v22 = vmul.f32 0.03125, %v1164_v19 }
 0xf65   :  { %v1166_v23 = vsub.f32 %v1157_v15, %v1165_v22 }
 0xf67   :  { %v1167_v24 = vmul.f32 %v1166_v23, %v1166_v23 }
 0xf69   :  { %v1168_v25 = vsel %vm89_vm0, %v1167_v24, 0.0 }
 0xf6a   :  { %1169 = vadd.xlane.f32.xlu1 %v1168_v25  ;;  %v1178_v30 = vpop.permute.xlu0 %1177 }
 0xf6e   :  { %v1184_v61 = vpop.permute.xlu0 %1183 }
 0xf7b   :  { %904 = vperm.xlu1 %1336, %v854_v26  }
 0xff7   :  { %v1170_v27 = vpop.xlane.xlu1 %1169 }
 0xff8   :  { %v1171_v28 = vmul.f32 0.03125, %v1170_v27 }
 0xffa   :  { %v1172_v29 = vadd.f32 1e-05, %v1171_v28 }
 0xffb   :  { %v905_v34 = vpop.permute.xlu1 %904 }
 0xffc   :  { %1405 = vrsqrt.f32 %v1172_v29  ;;  %v980_v36 = vadd.f32 %v979_v12, %v905_v34 }
0x1006   :  { %v1406_v31 = vpop.eup %1405 }
0x1007   :  { %v1174_v33 = vmul.f32 %v1406_v31, %v1166_v23 }
0x1009   :  { %v1180_v35 = vmul.f32 %v1178_v30, %v1174_v33 }
0x100b   :  { %v1186_v37 = vadd.f32 %v1184_v61, %v1180_v35 }
0x100d   :  { %v1187_v38 = vadd.f32 %v1186_v37, %v980_v36 }
0x100f   :  { %1188 = vst.msk [vmem:[%s1911_s27] sm:$0xf] %vm89_vm0, %v1187_v38 }

</bundles_post_ra>
